<compile_context>
chip_gen: v6e
topology: v6e:2x2x1
jax: 0.10.0
libtpu: 0.0.40
codegen_flags: <defaults>
</compile_context>

<pallas_src>
import functools

import numpy as np
import jax
import jax.numpy as jnp
from jax.experimental import pallas as pl
from jax.experimental.pallas import tpu as pltpu


# ---------------------------------------------------------------------------
# Plain-JAX glue: build the QuEn circuit unitary (small 2**n x 2**n matrix).
# ---------------------------------------------------------------------------
_I2 = jnp.eye(2, dtype=jnp.complex64)
_X = jnp.array([[0, 1], [1, 0]], dtype=jnp.complex64)
_P0 = jnp.array([[1, 0], [0, 0]], dtype=jnp.complex64)
_P1 = jnp.array([[0, 0], [0, 1]], dtype=jnp.complex64)


def _rx(t):
    c, s = jnp.cos(t / 2), jnp.sin(t / 2)
    return jnp.array([[c, -1j * s], [-1j * s, c]], dtype=jnp.complex64)


def _ry(t):
    c, s = jnp.cos(t / 2), jnp.sin(t / 2)
    return jnp.array([[c, -s], [s, c]], dtype=jnp.complex64)


def _rz(t):
    return jnp.array([[jnp.exp(-1j * t / 2), 0], [0, jnp.exp(1j * t / 2)]],
                     dtype=jnp.complex64)


def _kron_list(mats):
    return functools.reduce(jnp.kron, mats)


def _xyz_layer(n, w3n):
    # TODO(synk): deepquantum's XYZLayer parameter ordering assumed as
    #             [rx(0..n-1), ry(0..n-1), rz(0..n-1)], applied rx -> ry -> rz.
    wx, wy, wz = w3n[:n], w3n[n:2 * n], w3n[2 * n:3 * n]
    gates = [_rz(wz[i]) @ _ry(wy[i]) @ _rx(wx[i]) for i in range(n)]
    return _kron_list(gates)


def _cnot(n, c, t):
    a = [_P0 if i == c else _I2 for i in range(n)]
    b = [_P1 if i == c else (_X if i == t else _I2) for i in range(n)]
    return _kron_list(a) + _kron_list(b)


def _ring_of_cnot(n):
    U = jnp.eye(2 ** n, dtype=jnp.complex64)
    for i in range(n):
        U = _cnot(n, i, (i + 1) % n) @ U
    return U


def circuit_unitary(n_qubits, w):
    """U = XYZ_5 . ring . XYZ_4 . ring . XYZ_3 . ring . XYZ_2 . ring . XYZ_1"""
    n = n_qubits
    U = jnp.eye(2 ** n, dtype=jnp.complex64)
    ring = _ring_of_cnot(n)
    for layer in range(5):
        U = _xyz_layer(n, w[3 * n * layer: 3 * n * (layer + 1)]) @ U
        if layer < 4:
            U = ring @ U
    return U


# ---------------------------------------------------------------------------
# Pallas kernel (batch-on-lanes layout).
# ---------------------------------------------------------------------------
def _q_encoder_kernel(w_ref, x_ref, y_ref, r_ref, *, dA, dB):
    """One grid step processes tb states (the lane dimension).

    w_ref : (2D, 2D)       block-real unitary [[Ur, -Ui], [Ui, Ur]]
    x_ref : (2D, tb)       [Xr; Xi],  X[k, b] = molecular[b, 0, k]
    y_ref : (2D, tb)       [Yr; Yi],  Y = U @ x (column-vector convention)
    r_ref : (2*dA*dA, tb)  reduced rho; rows [0, dA*dA) real, rest imag,
                           r[a*dA + c, b] = reduced[b, a, c]
    """
    D = dA * dB
    dAA = dA * dA

    # Circuit application: single lane-dense MXU matmul, batch tile on N.
    y = jnp.dot(w_ref[...], x_ref[...], preferred_element_type=jnp.float32)
    y_ref[...] = y

    yr = y[:D]          # (D, tb)
    yi = y[D:]          # (D, tb)

    # Partial trace over the first dimB (most-significant) qubits:
    #   reduced[b, a, c] = sum_i y[i*dA + a, b] * conj(y[i*dA + c, b])
    # Fully unrolled (dA, dB are tiny static ints); every op is a full-lane
    # (1, tb) VPU multiply-add, and each result row is stored lane-dense
    # directly into r_ref (no accumulator lists, no lane-dim concatenate).
    # TODO(synk): for large dA*dB switch to an MXU contraction to bound the
    #             unrolled op count.
    for a in range(dA):
        for c in range(dA):
            acc_re = None
            acc_im = None
            for i in range(dB):
                ra, rc = i * dA + a, i * dA + c
                yra = yr[ra:ra + 1, :]           # (1, tb)
                yia = yi[ra:ra + 1, :]
                yrc = yr[rc:rc + 1, :]
                yic = yi[rc:rc + 1, :]
                # y_a * conj(y_c): re = ra*rc + ia*ic ; im = ia*rc - ra*ic
                t_re = yra * yrc + yia * yic
                t_im = yia * yrc - yra * yic
                acc_re = t_re if acc_re is None else acc_re + t_re
                acc_im = t_im if acc_im is None else acc_im + t_im
            row = a * dA + c
            r_ref[row:row + 1, :] = acc_re
            r_ref[dAA + row:dAA + row + 1, :] = acc_im


def _round_up(x, m):
    return ((x + m - 1) // m) * m


def _pick_batch_tile(B):
    """Batch tile (lane dim): multiple of 128, up to 1024, >=2 grid steps
    when B allows (keeps both v7x TensorCores busy via the parallel axis)."""
    bp = _round_up(max(B, 1), 128)
    tb = min(1024, bp)
    if tb > 128 and bp // tb < 2:
        tb = max(128, (tb // 2) // 128 * 128)
    return tb


def q_encoder(molecular, U, n_qubits, dimA):
    """Returns (encoder_rst, x_sv) matching Q_Encoder.forward for 3-D input."""
    B, one, D = molecular.shape
    assert one == 1 and D == 2 ** n_qubits
    dimB = n_qubits - dimA
    dB, dA = 2 ** dimB, 2 ** dimA
    dAA = dA * dA

    tb = _pick_batch_tile(B)
    Bp = _round_up(B, tb)
    grid = (Bp // tb,)

    # Block-real unitary (2D, 2D): Y = W @ [Xr; Xi] gives [Yr; Yi] for Y = U x.
    # NOTE(scaling): at D = 2**n_qubits the double-buffered W/X/Y working set
    # is ~ (4*D^2 + 4*D*tb*6) bytes; size it against ~16-24 MiB (v7x has
    # 64 MiB physical / 32 MiB default scoped VMEM). When n_qubits grows, add
    # a K-reduction grid axis (or pl.Buffered tiling of W) and optionally cast
    # W/X to bfloat16 (keep preferred_element_type=f32) on v6e/v7x.
    Ur = jnp.real(U).astype(jnp.float32)
    Ui = jnp.imag(U).astype(jnp.float32)
    W = jnp.block([[Ur, -Ui], [Ui, Ur]])                     # (2D, 2D)

    # Transposed, lane-dense input slab: (2D, Bp), rows = [Xr; Xi].
    xr = jnp.real(molecular).astype(jnp.float32).reshape(B, D)
    xi = jnp.imag(molecular).astype(jnp.float32).reshape(B, D)
    x_slab = jnp.zeros((2 * D, Bp), jnp.float32)
    x_slab = x_slab.at[:D, :B].set(xr.T).at[D:, :B].set(xi.T)

    kernel = functools.partial(_q_encoder_kernel, dA=dA, dB=dB)

    y_slab, r_slab = pl.pallas_call(
        kernel,
        out_shape=(
            jax.ShapeDtypeStruct((2 * D, Bp), jnp.float32),      # [Yr; Yi]
            jax.ShapeDtypeStruct((2 * dAA, Bp), jnp.float32),    # [Rre; Rim]
        ),
        grid=grid,
        in_specs=[
            pl.BlockSpec((2 * D, 2 * D), lambda g: (0, 0)),      # W (shared)
            pl.BlockSpec((2 * D, tb), lambda g: (0, g)),         # X batch tile
        ],
        out_specs=[
            pl.BlockSpec((2 * D, tb), lambda g: (0, g)),
            pl.BlockSpec((2 * dAA, tb), lambda g: (0, g)),
        ],
        compiler_params=pltpu.CompilerParams(
            dimension_semantics=("parallel",)),
    )(W, x_slab)

    # Un-transpose / un-pad in XLA (cheap; outside the kernel).
    x_sv = (y_slab[:D, :B] + 1j * y_slab[D:, :B]).T.astype(
        jnp.complex64).reshape(B, 1, D)
    encoder_rst = (r_slab[:dAA, :B] + 1j * r_slab[dAA:, :B]).T.astype(
        jnp.complex64).reshape(B, dA, dA)
    return encoder_rst, x_sv


# ---------------------------------------------------------------------------
# Reference (pure JAX) for the correctness check.
# ---------------------------------------------------------------------------
def q_encoder_ref(molecular, U, n_qubits, dimA):
    B = molecular.shape[0]
    dimB = n_qubits - dimA
    dB, dA = 2 ** dimB, 2 ** dimA
    # HIGHEST precision so the reference matmul is not bf16-demoted by XLA.
    y = jnp.einsum('jk,blk->blj', U, molecular,
                   precision=jax.lax.Precision.HIGHEST)        # (B,1,D)
    rho = y[:, 0, :, None] * jnp.conj(y)[:, 0, None, :]        # (B,D,D)
    rho5 = rho.reshape(B, dB, dA, dB, dA)
    reduced = jnp.trace(rho5, axis1=1, axis2=3)                # (B,dA,dA)
    return reduced, y


if __name__ == "__main__":
    n_qubits = 4
    dimA = 2
    B = 2
    D = 2 ** n_qubits

    key = jax.random.PRNGKey(0)
    kw, kx1, kx2 = jax.random.split(key, 3)

    # QuEn parameter init (use_wscale=True, gain=sqrt(2), lrmul=1)
    gain = 2 ** 0.5
    he_std = gain * 5 ** (-0.5)
    lrmul = 1.0
    init_std = 1.0 / lrmul
    w_mul = he_std * lrmul
    weight = jax.random.uniform(kw, (15 * n_qubits,), dtype=jnp.float32,
                                minval=0.0, maxval=2 * np.pi) * init_std
    w = weight * w_mul

    U = circuit_unitary(n_qubits, w)

    # input "molecular" quantum state: (B, 1, 2**n_qubits), normalized complex
    xr = jax.random.normal(kx1, (B, 1, D), dtype=jnp.float32)
    xi = jax.random.normal(kx2, (B, 1, D), dtype=jnp.float32)
    molecular = (xr + 1j * xi).astype(jnp.complex64)
    molecular = molecular / jnp.linalg.norm(molecular, axis=-1, keepdims=True)

    encoder_rst, x_sv = q_encoder(molecular, U, n_qubits, dimA)
    jax.block_until_ready((encoder_rst, x_sv))

    ref_rst, ref_sv = q_encoder_ref(molecular, U, n_qubits, dimA)
    # Tight tolerances (all-f32 path) so layout/indexing regressions are caught.
    assert jnp.allclose(x_sv, ref_sv, atol=1e-5, rtol=1e-5)
    assert jnp.allclose(encoder_rst, ref_rst, atol=1e-5, rtol=1e-5)

    print("KERNEL_OK")
</pallas_src>

<mosaic_0001>
module attributes {stable_mosaic.version = 11 : i64} {
  func.func @_q_encoder_kernel(%arg0: i32, %arg1: memref<32x32xf32, #tpu.memory_space<vmem>>, %arg2: memref<32x128xf32, #tpu.memory_space<vmem>>, %arg3: memref<32x128xf32, #tpu.memory_space<vmem>>, %arg4: memref<32x128xf32, #tpu.memory_space<vmem>>) attributes {dimension_semantics = [#tpu.dimension_semantics<parallel>], iteration_bounds = array<i64: 1>, scalar_prefetch = 0 : i64, scratch_operands = 0 : i64, tpu.core_type = #tpu.core_type<tc>, window_params = [{pipeline_mode = #tpu.pipeline_mode<synchronous>, transform_indices = @transform_0, window_bounds = array<i64: 32, 32>}, {transform_indices = @transform_1, window_bounds = array<i64: 32, 128>}, {transform_indices = @transform_2, window_bounds = array<i64: 32, 128>}, {transform_indices = @transform_3, window_bounds = array<i64: 32, 128>}]} {
    %c0 = arith.constant 0 : index
    %c0_0 = arith.constant 0 : index
    %0 = vector.load %arg1[%c0, %c0_0] : memref<32x32xf32, #tpu.memory_space<vmem>>, vector<32x32xf32>
    %c0_1 = arith.constant 0 : index
    %c0_2 = arith.constant 0 : index
    %1 = vector.load %arg2[%c0_1, %c0_2] : memref<32x128xf32, #tpu.memory_space<vmem>>, vector<32x128xf32>
    %cst = arith.constant dense<0.000000e+00> : vector<32x128xf32>
    %2 = tpu.matmul %0, %1, %cst {dimension_numbers = #tpu.dot_dimension_numbers<[1], [0], [0], [1], [0, 0, 1, 1], [], []>} : vector<32x32xf32>, vector<32x128xf32>, vector<32x128xf32> -> vector<32x128xf32>
    %c0_3 = arith.constant 0 : index
    %c0_4 = arith.constant 0 : index
    %3 = vector.load %arg3[%c0_3, %c0_4] : memref<32x128xf32, #tpu.memory_space<vmem>>, vector<32x128xf32>
    tpu.vector_store %arg3[%c0_3, %c0_4], %2 {strides = array<i32>} : memref<32x128xf32, #tpu.memory_space<vmem>>, vector<32x128xf32>,
    %4 = vector.extract_strided_slice %2 {offsets = [0, 0], sizes = [16, 128], strides = [1, 1]} : vector<32x128xf32> to vector<16x128xf32>
    %5 = vector.extract_strided_slice %2 {offsets = [16, 0], sizes = [16, 128], strides = [1, 1]} : vector<32x128xf32> to vector<16x128xf32>
    %6 = vector.extract_strided_slice %4 {offsets = [0, 0], sizes = [1, 128], strides = [1, 1]} : vector<16x128xf32> to vector<1x128xf32>
    %7 = vector.extract_strided_slice %5 {offsets = [0, 0], sizes = [1, 128], strides = [1, 1]} : vector<16x128xf32> to vector<1x128xf32>
    %8 = vector.extract_strided_slice %4 {offsets = [0, 0], sizes = [1, 128], strides = [1, 1]} : vector<16x128xf32> to vector<1x128xf32>
    %9 = vector.extract_strided_slice %5 {offsets = [0, 0], sizes = [1, 128], strides = [1, 1]} : vector<16x128xf32> to vector<1x128xf32>
    %10 = arith.mulf %6, %8 : vector<1x128xf32>
    %11 = arith.mulf %7, %9 : vector<1x128xf32>
    %12 = arith.addf %10, %11 : vector<1x128xf32>
    %13 = arith.mulf %7, %8 : vector<1x128xf32>
    %14 = arith.mulf %6, %9 : vector<1x128xf32>
    %15 = arith.subf %13, %14 : vector<1x128xf32>
    %16 = vector.extract_strided_slice %4 {offsets = [4, 0], sizes = [1, 128], strides = [1, 1]} : vector<16x128xf32> to vector<1x128xf32>
    %17 = vector.extract_strided_slice %5 {offsets = [4, 0], sizes = [1, 128], strides = [1, 1]} : vector<16x128xf32> to vector<1x128xf32>
    %18 = vector.extract_strided_slice %4 {offsets = [4, 0], sizes = [1, 128], strides = [1, 1]} : vector<16x128xf32> to vector<1x128xf32>
    %19 = vector.extract_strided_slice %5 {offsets = [4, 0], sizes = [1, 128], strides = [1, 1]} : vector<16x128xf32> to vector<1x128xf32>
    %20 = arith.mulf %16, %18 : vector<1x128xf32>
    %21 = arith.mulf %17, %19 : vector<1x128xf32>
    %22 = arith.addf %20, %21 : vector<1x128xf32>
    %23 = arith.mulf %17, %18 : vector<1x128xf32>
    %24 = arith.mulf %16, %19 : vector<1x128xf32>
    %25 = arith.subf %23, %24 : vector<1x128xf32>
    %26 = arith.addf %12, %22 : vector<1x128xf32>
    %27 = arith.addf %15, %25 : vector<1x128xf32>
    %28 = vector.extract_strided_slice %4 {offsets = [8, 0], sizes = [1, 128], strides = [1, 1]} : vector<16x128xf32> to vector<1x128xf32>
    %29 = vector.extract_strided_slice %5 {offsets = [8, 0], sizes = [1, 128], strides = [1, 1]} : vector<16x128xf32> to vector<1x128xf32>
    %30 = vector.extract_strided_slice %4 {offsets = [8, 0], sizes = [1, 128], strides = [1, 1]} : vector<16x128xf32> to vector<1x128xf32>
    %31 = vector.extract_strided_slice %5 {offsets = [8, 0], sizes = [1, 128], strides = [1, 1]} : vector<16x128xf32> to vector<1x128xf32>
    %32 = arith.mulf %28, %30 : vector<1x128xf32>
    %33 = arith.mulf %29, %31 : vector<1x128xf32>
    %34 = arith.addf %32, %33 : vector<1x128xf32>
    %35 = arith.mulf %29, %30 : vector<1x128xf32>
    %36 = arith.mulf %28, %31 : vector<1x128xf32>
    %37 = arith.subf %35, %36 : vector<1x128xf32>
    %38 = arith.addf %26, %34 : vector<1x128xf32>
    %39 = arith.addf %27, %37 : vector<1x128xf32>
    %40 = vector.extract_strided_slice %4 {offsets = [12, 0], sizes = [1, 128], strides = [1, 1]} : vector<16x128xf32> to vector<1x128xf32>
    %41 = vector.extract_strided_slice %5 {offsets = [12, 0], sizes = [1, 128], strides = [1, 1]} : vector<16x128xf32> to vector<1x128xf32>
    %42 = vector.extract_strided_slice %4 {offsets = [12, 0], sizes = [1, 128], strides = [1, 1]} : vector<16x128xf32> to vector<1x128xf32>
    %43 = vector.extract_strided_slice %5 {offsets = [12, 0], sizes = [1, 128], strides = [1, 1]} : vector<16x128xf32> to vector<1x128xf32>
    %44 = arith.mulf %40, %42 : vector<1x128xf32>
    %45 = arith.mulf %41, %43 : vector<1x128xf32>
    %46 = arith.addf %44, %45 : vector<1x128xf32>
    %47 = arith.mulf %41, %42 : vector<1x128xf32>
    %48 = arith.mulf %40, %43 : vector<1x128xf32>
    %49 = arith.subf %47, %48 : vector<1x128xf32>
    %50 = arith.addf %38, %46 : vector<1x128xf32>
    %51 = arith.addf %39, %49 : vector<1x128xf32>
    %c0_5 = arith.constant 0 : index
    %c0_6 = arith.constant 0 : index
    %52 = vector.load %arg4[%c0_5, %c0_6] : memref<32x128xf32, #tpu.memory_space<vmem>>, vector<1x128xf32>
    tpu.vector_store %arg4[%c0_5, %c0_6], %50 {strides = array<i32>} : memref<32x128xf32, #tpu.memory_space<vmem>>, vector<1x128xf32>,
    %c16 = arith.constant 16 : index
    %c0_7 = arith.constant 0 : index
    %53 = vector.load %arg4[%c16, %c0_7] : memref<32x128xf32, #tpu.memory_space<vmem>>, vector<1x128xf32>
    tpu.vector_store %arg4[%c16, %c0_7], %51 {strides = array<i32>} : memref<32x128xf32, #tpu.memory_space<vmem>>, vector<1x128xf32>,
    %54 = vector.extract_strided_slice %4 {offsets = [0, 0], sizes = [1, 128], strides = [1, 1]} : vector<16x128xf32> to vector<1x128xf32>
    %55 = vector.extract_strided_slice %5 {offsets = [0, 0], sizes = [1, 128], strides = [1, 1]} : vector<16x128xf32> to vector<1x128xf32>
    %56 = vector.extract_strided_slice %4 {offsets = [1, 0], sizes = [1, 128], strides = [1, 1]} : vector<16x128xf32> to vector<1x128xf32>
    %57 = vector.extract_strided_slice %5 {offsets = [1, 0], sizes = [1, 128], strides = [1, 1]} : vector<16x128xf32> to vector<1x128xf32>
    %58 = arith.mulf %54, %56 : vector<1x128xf32>
    %59 = arith.mulf %55, %57 : vector<1x128xf32>
    %60 = arith.addf %58, %59 : vector<1x128xf32>
    %61 = arith.mulf %55, %56 : vector<1x128xf32>
    %62 = arith.mulf %54, %57 : vector<1x128xf32>
    %63 = arith.subf %61, %62 : vector<1x128xf32>
    %64 = vector.extract_strided_slice %4 {offsets = [4, 0], sizes = [1, 128], strides = [1, 1]} : vector<16x128xf32> to vector<1x128xf32>
    %65 = vector.extract_strided_slice %5 {offsets = [4, 0], sizes = [1, 128], strides = [1, 1]} : vector<16x128xf32> to vector<1x128xf32>
    %66 = vector.extract_strided_slice %4 {offsets = [5, 0], sizes = [1, 128], strides = [1, 1]} : vector<16x128xf32> to vector<1x128xf32>
    %67 = vector.extract_strided_slice %5 {offsets = [5, 0], sizes = [1, 128], strides = [1, 1]} : vector<16x128xf32> to vector<1x128xf32>
    %68 = arith.mulf %64, %66 : vector<1x128xf32>
    %69 = arith.mulf %65, %67 : vector<1x128xf32>
    %70 = arith.addf %68, %69 : vector<1x128xf32>
    %71 = arith.mulf %65, %66 : vector<1x128xf32>
    %72 = arith.mulf %64, %67 : vector<1x128xf32>
    %73 = arith.subf %71, %72 : vector<1x128xf32>
    %74 = arith.addf %60, %70 : vector<1x128xf32>
    %75 = arith.addf %63, %73 : vector<1x128xf32>
    %76 = vector.extract_strided_slice %4 {offsets = [8, 0], sizes = [1, 128], strides = [1, 1]} : vector<16x128xf32> to vector<1x128xf32>
    %77 = vector.extract_strided_slice %5 {offsets = [8, 0], sizes = [1, 128], strides = [1, 1]} : vector<16x128xf32> to vector<1x128xf32>
    %78 = vector.extract_strided_slice %4 {offsets = [9, 0], sizes = [1, 128], strides = [1, 1]} : vector<16x128xf32> to vector<1x128xf32>
    %79 = vector.extract_strided_slice %5 {offsets = [9, 0], sizes = [1, 128], strides = [1, 1]} : vector<16x128xf32> to vector<1x128xf32>
    %80 = arith.mulf %76, %78 : vector<1x128xf32>
    %81 = arith.mulf %77, %79 : vector<1x128xf32>
    %82 = arith.addf %80, %81 : vector<1x128xf32>
    %83 = arith.mulf %77, %78 : vector<1x128xf32>
    %84 = arith.mulf %76, %79 : vector<1x128xf32>
    %85 = arith.subf %83, %84 : vector<1x128xf32>
    %86 = arith.addf %74, %82 : vector<1x128xf32>
    %87 = arith.addf %75, %85 : vector<1x128xf32>
    %88 = vector.extract_strided_slice %4 {offsets = [12, 0], sizes = [1, 128], strides = [1, 1]} : vector<16x128xf32> to vector<1x128xf32>
    %89 = vector.extract_strided_slice %5 {offsets = [12, 0], sizes = [1, 128], strides = [1, 1]} : vector<16x128xf32> to vector<1x128xf32>
    %90 = vector.extract_strided_slice %4 {offsets = [13, 0], sizes = [1, 128], strides = [1, 1]} : vector<16x128xf32> to vector<1x128xf32>
    %91 = vector.extract_strided_slice %5 {offsets = [13, 0], sizes = [1, 128], strides = [1, 1]} : vector<16x128xf32> to vector<1x128xf32>
    %92 = arith.mulf %88, %90 : vector<1x128xf32>
    %93 = arith.mulf %89, %91 : vector<1x128xf32>
    %94 = arith.addf %92, %93 : vector<1x128xf32>
    %95 = arith.mulf %89, %90 : vector<1x128xf32>
    %96 = arith.mulf %88, %91 : vector<1x128xf32>
    %97 = arith.subf %95, %96 : vector<1x128xf32>
    %98 = arith.addf %86, %94 : vector<1x128xf32>
    %99 = arith.addf %87, %97 : vector<1x128xf32>
    %c1 = arith.constant 1 : index
    %c0_8 = arith.constant 0 : index
    %100 = vector.load %arg4[%c1, %c0_8] : memref<32x128xf32, #tpu.memory_space<vmem>>, vector<1x128xf32>
    tpu.vector_store %arg4[%c1, %c0_8], %98 {strides = array<i32>} : memref<32x128xf32, #tpu.memory_space<vmem>>, vector<1x128xf32>,
    %c17 = arith.constant 17 : index
    %c0_9 = arith.constant 0 : index
    %101 = vector.load %arg4[%c17, %c0_9] : memref<32x128xf32, #tpu.memory_space<vmem>>, vector<1x128xf32>
    tpu.vector_store %arg4[%c17, %c0_9], %99 {strides = array<i32>} : memref<32x128xf32, #tpu.memory_space<vmem>>, vector<1x128xf32>,
    %102 = vector.extract_strided_slice %4 {offsets = [0, 0], sizes = [1, 128], strides = [1, 1]} : vector<16x128xf32> to vector<1x128xf32>
    %103 = vector.extract_strided_slice %5 {offsets = [0, 0], sizes = [1, 128], strides = [1, 1]} : vector<16x128xf32> to vector<1x128xf32>
    %104 = vector.extract_strided_slice %4 {offsets = [2, 0], sizes = [1, 128], strides = [1, 1]} : vector<16x128xf32> to vector<1x128xf32>
    %105 = vector.extract_strided_slice %5 {offsets = [2, 0], sizes = [1, 128], strides = [1, 1]} : vector<16x128xf32> to vector<1x128xf32>
    %106 = arith.mulf %102, %104 : vector<1x128xf32>
    %107 = arith.mulf %103, %105 : vector<1x128xf32>
    %108 = arith.addf %106, %107 : vector<1x128xf32>
    %109 = arith.mulf %103, %104 : vector<1x128xf32>
    %110 = arith.mulf %102, %105 : vector<1x128xf32>
    %111 = arith.subf %109, %110 : vector<1x128xf32>
    %112 = vector.extract_strided_slice %4 {offsets = [4, 0], sizes = [1, 128], strides = [1, 1]} : vector<16x128xf32> to vector<1x128xf32>
    %113 = vector.extract_strided_slice %5 {offsets = [4, 0], sizes = [1, 128], strides = [1, 1]} : vector<16x128xf32> to vector<1x128xf32>
    %114 = vector.extract_strided_slice %4 {offsets = [6, 0], sizes = [1, 128], strides = [1, 1]} : vector<16x128xf32> to vector<1x128xf32>
    %115 = vector.extract_strided_slice %5 {offsets = [6, 0], sizes = [1, 128], strides = [1, 1]} : vector<16x128xf32> to vector<1x128xf32>
    %116 = arith.mulf %112, %114 : vector<1x128xf32>
    %117 = arith.mulf %113, %115 : vector<1x128xf32>
    %118 = arith.addf %116, %117 : vector<1x128xf32>
    %119 = arith.mulf %113, %114 : vector<1x128xf32>
    %120 = arith.mulf %112, %115 : vector<1x128xf32>
    %121 = arith.subf %119, %120 : vector<1x128xf32>
    %122 = arith.addf %108, %118 : vector<1x128xf32>
    %123 = arith.addf %111, %121 : vector<1x128xf32>
    %124 = vector.extract_strided_slice %4 {offsets = [8, 0], sizes = [1, 128], strides = [1, 1]} : vector<16x128xf32> to vector<1x128xf32>
    %125 = vector.extract_strided_slice %5 {offsets = [8, 0], sizes = [1, 128], strides = [1, 1]} : vector<16x128xf32> to vector<1x128xf32>
    %126 = vector.extract_strided_slice %4 {offsets = [10, 0], sizes = [1, 128], strides = [1, 1]} : vector<16x128xf32> to vector<1x128xf32>
    %127 = vector.extract_strided_slice %5 {offsets = [10, 0], sizes = [1, 128], strides = [1, 1]} : vector<16x128xf32> to vector<1x128xf32>
    %128 = arith.mulf %124, %126 : vector<1x128xf32>
    %129 = arith.mulf %125, %127 : vector<1x128xf32>
    %130 = arith.addf %128, %129 : vector<1x128xf32>
    %131 = arith.mulf %125, %126 : vector<1x128xf32>
    %132 = arith.mulf %124, %127 : vector<1x128xf32>
    %133 = arith.subf %131, %132 : vector<1x128xf32>
    %134 = arith.addf %122, %130 : vector<1x128xf32>
    %135 = arith.addf %123, %133 : vector<1x128xf32>
    %136 = vector.extract_strided_slice %4 {offsets = [12, 0], sizes = [1, 128], strides = [1, 1]} : vector<16x128xf32> to vector<1x128xf32>
    %137 = vector.extract_strided_slice %5 {offsets = [12, 0], sizes = [1, 128], strides = [1, 1]} : vector<16x128xf32> to vector<1x128xf32>
    %138 = vector.extract_strided_slice %4 {offsets = [14, 0], sizes = [1, 128], strides = [1, 1]} : vector<16x128xf32> to vector<1x128xf32>
    %139 = vector.extract_strided_slice %5 {offsets = [14, 0], sizes = [1, 128], strides = [1, 1]} : vector<16x128xf32> to vector<1x128xf32>
    %140 = arith.mulf %136, %138 : vector<1x128xf32>
    %141 = arith.mulf %137, %139 : vector<1x128xf32>
    %142 = arith.addf %140, %141 : vector<1x128xf32>
    %143 = arith.mulf %137, %138 : vector<1x128xf32>
    %144 = arith.mulf %136, %139 : vector<1x128xf32>
    %145 = arith.subf %143, %144 : vector<1x128xf32>
    %146 = arith.addf %134, %142 : vector<1x128xf32>
    %147 = arith.addf %135, %145 : vector<1x128xf32>
    %c2 = arith.constant 2 : index
    %c0_10 = arith.constant 0 : index
    %148 = vector.load %arg4[%c2, %c0_10] : memref<32x128xf32, #tpu.memory_space<vmem>>, vector<1x128xf32>
    tpu.vector_store %arg4[%c2, %c0_10], %146 {strides = array<i32>} : memref<32x128xf32, #tpu.memory_space<vmem>>, vector<1x128xf32>,
    %c18 = arith.constant 18 : index
    %c0_11 = arith.constant 0 : index
    %149 = vector.load %arg4[%c18, %c0_11] : memref<32x128xf32, #tpu.memory_space<vmem>>, vector<1x128xf32>
    tpu.vector_store %arg4[%c18, %c0_11], %147 {strides = array<i32>} : memref<32x128xf32, #tpu.memory_space<vmem>>, vector<1x128xf32>,
    %150 = vector.extract_strided_slice %4 {offsets = [0, 0], sizes = [1, 128], strides = [1, 1]} : vector<16x128xf32> to vector<1x128xf32>
    %151 = vector.extract_strided_slice %5 {offsets = [0, 0], sizes = [1, 128], strides = [1, 1]} : vector<16x128xf32> to vector<1x128xf32>
    %152 = vector.extract_strided_slice %4 {offsets = [3, 0], sizes = [1, 128], strides = [1, 1]} : vector<16x128xf32> to vector<1x128xf32>
    %153 = vector.extract_strided_slice %5 {offsets = [3, 0], sizes = [1, 128], strides = [1, 1]} : vector<16x128xf32> to vector<1x128xf32>
    %154 = arith.mulf %150, %152 : vector<1x128xf32>
    %155 = arith.mulf %151, %153 : vector<1x128xf32>
    %156 = arith.addf %154, %155 : vector<1x128xf32>
    %157 = arith.mulf %151, %152 : vector<1x128xf32>
    %158 = arith.mulf %150, %153 : vector<1x128xf32>
    %159 = arith.subf %157, %158 : vector<1x128xf32>
    %160 = vector.extract_strided_slice %4 {offsets = [4, 0], sizes = [1, 128], strides = [1, 1]} : vector<16x128xf32> to vector<1x128xf32>
    %161 = vector.extract_strided_slice %5 {offsets = [4, 0], sizes = [1, 128], strides = [1, 1]} : vector<16x128xf32> to vector<1x128xf32>
    %162 = vector.extract_strided_slice %4 {offsets = [7, 0], sizes = [1, 128], strides = [1, 1]} : vector<16x128xf32> to vector<1x128xf32>
    %163 = vector.extract_strided_slice %5 {offsets = [7, 0], sizes = [1, 128], strides = [1, 1]} : vector<16x128xf32> to vector<1x128xf32>
    %164 = arith.mulf %160, %162 : vector<1x128xf32>
    %165 = arith.mulf %161, %163 : vector<1x128xf32>
    %166 = arith.addf %164, %165 : vector<1x128xf32>
    %167 = arith.mulf %161, %162 : vector<1x128xf32>
    %168 = arith.mulf %160, %163 : vector<1x128xf32>
    %169 = arith.subf %167, %168 : vector<1x128xf32>
    %170 = arith.addf %156, %166 : vector<1x128xf32>
    %171 = arith.addf %159, %169 : vector<1x128xf32>
    %172 = vector.extract_strided_slice %4 {offsets = [8, 0], sizes = [1, 128], strides = [1, 1]} : vector<16x128xf32> to vector<1x128xf32>
    %173 = vector.extract_strided_slice %5 {offsets = [8, 0], sizes = [1, 128], strides = [1, 1]} : vector<16x128xf32> to vector<1x128xf32>
    %174 = vector.extract_strided_slice %4 {offsets = [11, 0], sizes = [1, 128], strides = [1, 1]} : vector<16x128xf32> to vector<1x128xf32>
    %175 = vector.extract_strided_slice %5 {offsets = [11, 0], sizes = [1, 128], strides = [1, 1]} : vector<16x128xf32> to vector<1x128xf32>
    %176 = arith.mulf %172, %174 : vector<1x128xf32>
    %177 = arith.mulf %173, %175 : vector<1x128xf32>
    %178 = arith.addf %176, %177 : vector<1x128xf32>
    %179 = arith.mulf %173, %174 : vector<1x128xf32>
    %180 = arith.mulf %172, %175 : vector<1x128xf32>
    %181 = arith.subf %179, %180 : vector<1x128xf32>
    %182 = arith.addf %170, %178 : vector<1x128xf32>
    %183 = arith.addf %171, %181 : vector<1x128xf32>
    %184 = vector.extract_strided_slice %4 {offsets = [12, 0], sizes = [1, 128], strides = [1, 1]} : vector<16x128xf32> to vector<1x128xf32>
    %185 = vector.extract_strided_slice %5 {offsets = [12, 0], sizes = [1, 128], strides = [1, 1]} : vector<16x128xf32> to vector<1x128xf32>
    %186 = vector.extract_strided_slice %4 {offsets = [15, 0], sizes = [1, 128], strides = [1, 1]} : vector<16x128xf32> to vector<1x128xf32>
    %187 = vector.extract_strided_slice %5 {offsets = [15, 0], sizes = [1, 128], strides = [1, 1]} : vector<16x128xf32> to vector<1x128xf32>
    %188 = arith.mulf %184, %186 : vector<1x128xf32>
    %189 = arith.mulf %185, %187 : vector<1x128xf32>
    %190 = arith.addf %188, %189 : vector<1x128xf32>
    %191 = arith.mulf %185, %186 : vector<1x128xf32>
    %192 = arith.mulf %184, %187 : vector<1x128xf32>
    %193 = arith.subf %191, %192 : vector<1x128xf32>
    %194 = arith.addf %182, %190 : vector<1x128xf32>
    %195 = arith.addf %183, %193 : vector<1x128xf32>
    %c3 = arith.constant 3 : index
    %c0_12 = arith.constant 0 : index
    %196 = vector.load %arg4[%c3, %c0_12] : memref<32x128xf32, #tpu.memory_space<vmem>>, vector<1x128xf32>
    tpu.vector_store %arg4[%c3, %c0_12], %194 {strides = array<i32>} : memref<32x128xf32, #tpu.memory_space<vmem>>, vector<1x128xf32>,
    %c19 = arith.constant 19 : index
    %c0_13 = arith.constant 0 : index
    %197 = vector.load %arg4[%c19, %c0_13] : memref<32x128xf32, #tpu.memory_space<vmem>>, vector<1x128xf32>
    tpu.vector_store %arg4[%c19, %c0_13], %195 {strides = array<i32>} : memref<32x128xf32, #tpu.memory_space<vmem>>, vector<1x128xf32>,
    %198 = vector.extract_strided_slice %4 {offsets = [1, 0], sizes = [1, 128], strides = [1, 1]} : vector<16x128xf32> to vector<1x128xf32>
    %199 = vector.extract_strided_slice %5 {offsets = [1, 0], sizes = [1, 128], strides = [1, 1]} : vector<16x128xf32> to vector<1x128xf32>
    %200 = vector.extract_strided_slice %4 {offsets = [0, 0], sizes = [1, 128], strides = [1, 1]} : vector<16x128xf32> to vector<1x128xf32>
    %201 = vector.extract_strided_slice %5 {offsets = [0, 0], sizes = [1, 128], strides = [1, 1]} : vector<16x128xf32> to vector<1x128xf32>
    %202 = arith.mulf %198, %200 : vector<1x128xf32>
    %203 = arith.mulf %199, %201 : vector<1x128xf32>
    %204 = arith.addf %202, %203 : vector<1x128xf32>
    %205 = arith.mulf %199, %200 : vector<1x128xf32>
    %206 = arith.mulf %198, %201 : vector<1x128xf32>
    %207 = arith.subf %205, %206 : vector<1x128xf32>
    %208 = vector.extract_strided_slice %4 {offsets = [5, 0], sizes = [1, 128], strides = [1, 1]} : vector<16x128xf32> to vector<1x128xf32>
    %209 = vector.extract_strided_slice %5 {offsets = [5, 0], sizes = [1, 128], strides = [1, 1]} : vector<16x128xf32> to vector<1x128xf32>
    %210 = vector.extract_strided_slice %4 {offsets = [4, 0], sizes = [1, 128], strides = [1, 1]} : vector<16x128xf32> to vector<1x128xf32>
    %211 = vector.extract_strided_slice %5 {offsets = [4, 0], sizes = [1, 128], strides = [1, 1]} : vector<16x128xf32> to vector<1x128xf32>
    %212 = arith.mulf %208, %210 : vector<1x128xf32>
    %213 = arith.mulf %209, %211 : vector<1x128xf32>
    %214 = arith.addf %212, %213 : vector<1x128xf32>
    %215 = arith.mulf %209, %210 : vector<1x128xf32>
    %216 = arith.mulf %208, %211 : vector<1x128xf32>
    %217 = arith.subf %215, %216 : vector<1x128xf32>
    %218 = arith.addf %204, %214 : vector<1x128xf32>
    %219 = arith.addf %207, %217 : vector<1x128xf32>
    %220 = vector.extract_strided_slice %4 {offsets = [9, 0], sizes = [1, 128], strides = [1, 1]} : vector<16x128xf32> to vector<1x128xf32>
    %221 = vector.extract_strided_slice %5 {offsets = [9, 0], sizes = [1, 128], strides = [1, 1]} : vector<16x128xf32> to vector<1x128xf32>
    %222 = vector.extract_strided_slice %4 {offsets = [8, 0], sizes = [1, 128], strides = [1, 1]} : vector<16x128xf32> to vector<1x128xf32>
    %223 = vector.extract_strided_slice %5 {offsets = [8, 0], sizes = [1, 128], strides = [1, 1]} : vector<16x128xf32> to vector<1x128xf32>
    %224 = arith.mulf %220, %222 : vector<1x128xf32>
    %225 = arith.mulf %221, %223 : vector<1x128xf32>
    %226 = arith.addf %224, %225 : vector<1x128xf32>
    %227 = arith.mulf %221, %222 : vector<1x128xf32>
    %228 = arith.mulf %220, %223 : vector<1x128xf32>
    %229 = arith.subf %227, %228 : vector<1x128xf32>
    %230 = arith.addf %218, %226 : vector<1x128xf32>
    %231 = arith.addf %219, %229 : vector<1x128xf32>
    %232 = vector.extract_strided_slice %4 {offsets = [13, 0], sizes = [1, 128], strides = [1, 1]} : vector<16x128xf32> to vector<1x128xf32>
    %233 = vector.extract_strided_slice %5 {offsets = [13, 0], sizes = [1, 128], strides = [1, 1]} : vector<16x128xf32> to vector<1x128xf32>
    %234 = vector.extract_strided_slice %4 {offsets = [12, 0], sizes = [1, 128], strides = [1, 1]} : vector<16x128xf32> to vector<1x128xf32>
    %235 = vector.extract_strided_slice %5 {offsets = [12, 0], sizes = [1, 128], strides = [1, 1]} : vector<16x128xf32> to vector<1x128xf32>
    %236 = arith.mulf %232, %234 : vector<1x128xf32>
    %237 = arith.mulf %233, %235 : vector<1x128xf32>
    %238 = arith.addf %236, %237 : vector<1x128xf32>
    %239 = arith.mulf %233, %234 : vector<1x128xf32>
    %240 = arith.mulf %232, %235 : vector<1x128xf32>
    %241 = arith.subf %239, %240 : vector<1x128xf32>
    %242 = arith.addf %230, %238 : vector<1x128xf32>
    %243 = arith.addf %231, %241 : vector<1x128xf32>
    %c4 = arith.constant 4 : index
    %c0_14 = arith.constant 0 : index
    %244 = vector.load %arg4[%c4, %c0_14] : memref<32x128xf32, #tpu.memory_space<vmem>>, vector<1x128xf32>
    tpu.vector_store %arg4[%c4, %c0_14], %242 {strides = array<i32>} : memref<32x128xf32, #tpu.memory_space<vmem>>, vector<1x128xf32>,
    %c20 = arith.constant 20 : index
    %c0_15 = arith.constant 0 : index
    %245 = vector.load %arg4[%c20, %c0_15] : memref<32x128xf32, #tpu.memory_space<vmem>>, vector<1x128xf32>
    tpu.vector_store %arg4[%c20, %c0_15], %243 {strides = array<i32>} : memref<32x128xf32, #tpu.memory_space<vmem>>, vector<1x128xf32>,
    %246 = vector.extract_strided_slice %4 {offsets = [1, 0], sizes = [1, 128], strides = [1, 1]} : vector<16x128xf32> to vector<1x128xf32>
    %247 = vector.extract_strided_slice %5 {offsets = [1, 0], sizes = [1, 128], strides = [1, 1]} : vector<16x128xf32> to vector<1x128xf32>
    %248 = vector.extract_strided_slice %4 {offsets = [1, 0], sizes = [1, 128], strides = [1, 1]} : vector<16x128xf32> to vector<1x128xf32>
    %249 = vector.extract_strided_slice %5 {offsets = [1, 0], sizes = [1, 128], strides = [1, 1]} : vector<16x128xf32> to vector<1x128xf32>
    %250 = arith.mulf %246, %248 : vector<1x128xf32>
    %251 = arith.mulf %247, %249 : vector<1x128xf32>
    %252 = arith.addf %250, %251 : vector<1x128xf32>
    %253 = arith.mulf %247, %248 : vector<1x128xf32>
    %254 = arith.mulf %246, %249 : vector<1x128xf32>
    %255 = arith.subf %253, %254 : vector<1x128xf32>
    %256 = vector.extract_strided_slice %4 {offsets = [5, 0], sizes = [1, 128], strides = [1, 1]} : vector<16x128xf32> to vector<1x128xf32>
    %257 = vector.extract_strided_slice %5 {offsets = [5, 0], sizes = [1, 128], strides = [1, 1]} : vector<16x128xf32> to vector<1x128xf32>
    %258 = vector.extract_strided_slice %4 {offsets = [5, 0], sizes = [1, 128], strides = [1, 1]} : vector<16x128xf32> to vector<1x128xf32>
    %259 = vector.extract_strided_slice %5 {offsets = [5, 0], sizes = [1, 128], strides = [1, 1]} : vector<16x128xf32> to vector<1x128xf32>
    %260 = arith.mulf %256, %258 : vector<1x128xf32>
    %261 = arith.mulf %257, %259 : vector<1x128xf32>
    %262 = arith.addf %260, %261 : vector<1x128xf32>
    %263 = arith.mulf %257, %258 : vector<1x128xf32>
    %264 = arith.mulf %256, %259 : vector<1x128xf32>
    %265 = arith.subf %263, %264 : vector<1x128xf32>
    %266 = arith.addf %252, %262 : vector<1x128xf32>
    %267 = arith.addf %255, %265 : vector<1x128xf32>
    %268 = vector.extract_strided_slice %4 {offsets = [9, 0], sizes = [1, 128], strides = [1, 1]} : vector<16x128xf32> to vector<1x128xf32>
    %269 = vector.extract_strided_slice %5 {offsets = [9, 0], sizes = [1, 128], strides = [1, 1]} : vector<16x128xf32> to vector<1x128xf32>
    %270 = vector.extract_strided_slice %4 {offsets = [9, 0], sizes = [1, 128], strides = [1, 1]} : vector<16x128xf32> to vector<1x128xf32>
    %271 = vector.extract_strided_slice %5 {offsets = [9, 0], sizes = [1, 128], strides = [1, 1]} : vector<16x128xf32> to vector<1x128xf32>
    %272 = arith.mulf %268, %270 : vector<1x128xf32>
    %273 = arith.mulf %269, %271 : vector<1x128xf32>
    %274 = arith.addf %272, %273 : vector<1x128xf32>
    %275 = arith.mulf %269, %270 : vector<1x128xf32>
    %276 = arith.mulf %268, %271 : vector<1x128xf32>
    %277 = arith.subf %275, %276 : vector<1x128xf32>
    %278 = arith.addf %266, %274 : vector<1x128xf32>
    %279 = arith.addf %267, %277 : vector<1x128xf32>
    %280 = vector.extract_strided_slice %4 {offsets = [13, 0], sizes = [1, 128], strides = [1, 1]} : vector<16x128xf32> to vector<1x128xf32>
    %281 = vector.extract_strided_slice %5 {offsets = [13, 0], sizes = [1, 128], strides = [1, 1]} : vector<16x128xf32> to vector<1x128xf32>
    %282 = vector.extract_strided_slice %4 {offsets = [13, 0], sizes = [1, 128], strides = [1, 1]} : vector<16x128xf32> to vector<1x128xf32>
    %283 = vector.extract_strided_slice %5 {offsets = [13, 0], sizes = [1, 128], strides = [1, 1]} : vector<16x128xf32> to vector<1x128xf32>
    %284 = arith.mulf %280, %282 : vector<1x128xf32>
    %285 = arith.mulf %281, %283 : vector<1x128xf32>
    %286 = arith.addf %284, %285 : vector<1x128xf32>
    %287 = arith.mulf %281, %282 : vector<1x128xf32>
    %288 = arith.mulf %280, %283 : vector<1x128xf32>
    %289 = arith.subf %287, %288 : vector<1x128xf32>
    %290 = arith.addf %278, %286 : vector<1x128xf32>
    %291 = arith.addf %279, %289 : vector<1x128xf32>
    %c5 = arith.constant 5 : index
    %c0_16 = arith.constant 0 : index
    %292 = vector.load %arg4[%c5, %c0_16] : memref<32x128xf32, #tpu.memory_space<vmem>>, vector<1x128xf32>
    tpu.vector_store %arg4[%c5, %c0_16], %290 {strides = array<i32>} : memref<32x128xf32, #tpu.memory_space<vmem>>, vector<1x128xf32>,
    %c21 = arith.constant 21 : index
    %c0_17 = arith.constant 0 : index
    %293 = vector.load %arg4[%c21, %c0_17] : memref<32x128xf32, #tpu.memory_space<vmem>>, vector<1x128xf32>
    tpu.vector_store %arg4[%c21, %c0_17], %291 {strides = array<i32>} : memref<32x128xf32, #tpu.memory_space<vmem>>, vector<1x128xf32>,
    %294 = vector.extract_strided_slice %4 {offsets = [1, 0], sizes = [1, 128], strides = [1, 1]} : vector<16x128xf32> to vector<1x128xf32>
    %295 = vector.extract_strided_slice %5 {offsets = [1, 0], sizes = [1, 128], strides = [1, 1]} : vector<16x128xf32> to vector<1x128xf32>
    %296 = vector.extract_strided_slice %4 {offsets = [2, 0], sizes = [1, 128], strides = [1, 1]} : vector<16x128xf32> to vector<1x128xf32>
    %297 = vector.extract_strided_slice %5 {offsets = [2, 0], sizes = [1, 128], strides = [1, 1]} : vector<16x128xf32> to vector<1x128xf32>
    %298 = arith.mulf %294, %296 : vector<1x128xf32>
    %299 = arith.mulf %295, %297 : vector<1x128xf32>
    %300 = arith.addf %298, %299 : vector<1x128xf32>
    %301 = arith.mulf %295, %296 : vector<1x128xf32>
    %302 = arith.mulf %294, %297 : vector<1x128xf32>
    %303 = arith.subf %301, %302 : vector<1x128xf32>
    %304 = vector.extract_strided_slice %4 {offsets = [5, 0], sizes = [1, 128], strides = [1, 1]} : vector<16x128xf32> to vector<1x128xf32>
    %305 = vector.extract_strided_slice %5 {offsets = [5, 0], sizes = [1, 128], strides = [1, 1]} : vector<16x128xf32> to vector<1x128xf32>
    %306 = vector.extract_strided_slice %4 {offsets = [6, 0], sizes = [1, 128], strides = [1, 1]} : vector<16x128xf32> to vector<1x128xf32>
    %307 = vector.extract_strided_slice %5 {offsets = [6, 0], sizes = [1, 128], strides = [1, 1]} : vector<16x128xf32> to vector<1x128xf32>
    %308 = arith.mulf %304, %306 : vector<1x128xf32>
    %309 = arith.mulf %305, %307 : vector<1x128xf32>
    %310 = arith.addf %308, %309 : vector<1x128xf32>
    %311 = arith.mulf %305, %306 : vector<1x128xf32>
    %312 = arith.mulf %304, %307 : vector<1x128xf32>
    %313 = arith.subf %311, %312 : vector<1x128xf32>
    %314 = arith.addf %300, %310 : vector<1x128xf32>
    %315 = arith.addf %303, %313 : vector<1x128xf32>
    %316 = vector.extract_strided_slice %4 {offsets = [9, 0], sizes = [1, 128], strides = [1, 1]} : vector<16x128xf32> to vector<1x128xf32>
    %317 = vector.extract_strided_slice %5 {offsets = [9, 0], sizes = [1, 128], strides = [1, 1]} : vector<16x128xf32> to vector<1x128xf32>
    %318 = vector.extract_strided_slice %4 {offsets = [10, 0], sizes = [1, 128], strides = [1, 1]} : vector<16x128xf32> to vector<1x128xf32>
    %319 = vector.extract_strided_slice %5 {offsets = [10, 0], sizes = [1, 128], strides = [1, 1]} : vector<16x128xf32> to vector<1x128xf32>
    %320 = arith.mulf %316, %318 : vector<1x128xf32>
    %321 = arith.mulf %317, %319 : vector<1x128xf32>
    %322 = arith.addf %320, %321 : vector<1x128xf32>
    %323 = arith.mulf %317, %318 : vector<1x128xf32>
    %324 = arith.mulf %316, %319 : vector<1x128xf32>
    %325 = arith.subf %323, %324 : vector<1x128xf32>
    %326 = arith.addf %314, %322 : vector<1x128xf32>
    %327 = arith.addf %315, %325 : vector<1x128xf32>
    %328 = vector.extract_strided_slice %4 {offsets = [13, 0], sizes = [1, 128], strides = [1, 1]} : vector<16x128xf32> to vector<1x128xf32>
    %329 = vector.extract_strided_slice %5 {offsets = [13, 0], sizes = [1, 128], strides = [1, 1]} : vector<16x128xf32> to vector<1x128xf32>
    %330 = vector.extract_strided_slice %4 {offsets = [14, 0], sizes = [1, 128], strides = [1, 1]} : vector<16x128xf32> to vector<1x128xf32>
    %331 = vector.extract_strided_slice %5 {offsets = [14, 0], sizes = [1, 128], strides = [1, 1]} : vector<16x128xf32> to vector<1x128xf32>
    %332 = arith.mulf %328, %330 : vector<1x128xf32>
    %333 = arith.mulf %329, %331 : vector<1x128xf32>
    %334 = arith.addf %332, %333 : vector<1x128xf32>
    %335 = arith.mulf %329, %330 : vector<1x128xf32>
    %336 = arith.mulf %328, %331 : vector<1x128xf32>
    %337 = arith.subf %335, %336 : vector<1x128xf32>
    %338 = arith.addf %326, %334 : vector<1x128xf32>
    %339 = arith.addf %327, %337 : vector<1x128xf32>
    %c6 = arith.constant 6 : index
    %c0_18 = arith.constant 0 : index
    %340 = vector.load %arg4[%c6, %c0_18] : memref<32x128xf32, #tpu.memory_space<vmem>>, vector<1x128xf32>
    tpu.vector_store %arg4[%c6, %c0_18], %338 {strides = array<i32>} : memref<32x128xf32, #tpu.memory_space<vmem>>, vector<1x128xf32>,
    %c22 = arith.constant 22 : index
    %c0_19 = arith.constant 0 : index
    %341 = vector.load %arg4[%c22, %c0_19] : memref<32x128xf32, #tpu.memory_space<vmem>>, vector<1x128xf32>
    tpu.vector_store %arg4[%c22, %c0_19], %339 {strides = array<i32>} : memref<32x128xf32, #tpu.memory_space<vmem>>, vector<1x128xf32>,
    %342 = vector.extract_strided_slice %4 {offsets = [1, 0], sizes = [1, 128], strides = [1, 1]} : vector<16x128xf32> to vector<1x128xf32>
    %343 = vector.extract_strided_slice %5 {offsets = [1, 0], sizes = [1, 128], strides = [1, 1]} : vector<16x128xf32> to vector<1x128xf32>
    %344 = vector.extract_strided_slice %4 {offsets = [3, 0], sizes = [1, 128], strides = [1, 1]} : vector<16x128xf32> to vector<1x128xf32>
    %345 = vector.extract_strided_slice %5 {offsets = [3, 0], sizes = [1, 128], strides = [1, 1]} : vector<16x128xf32> to vector<1x128xf32>
    %346 = arith.mulf %342, %344 : vector<1x128xf32>
    %347 = arith.mulf %343, %345 : vector<1x128xf32>
    %348 = arith.addf %346, %347 : vector<1x128xf32>
    %349 = arith.mulf %343, %344 : vector<1x128xf32>
    %350 = arith.mulf %342, %345 : vector<1x128xf32>
    %351 = arith.subf %349, %350 : vector<1x128xf32>
    %352 = vector.extract_strided_slice %4 {offsets = [5, 0], sizes = [1, 128], strides = [1, 1]} : vector<16x128xf32> to vector<1x128xf32>
    %353 = vector.extract_strided_slice %5 {offsets = [5, 0], sizes = [1, 128], strides = [1, 1]} : vector<16x128xf32> to vector<1x128xf32>
    %354 = vector.extract_strided_slice %4 {offsets = [7, 0], sizes = [1, 128], strides = [1, 1]} : vector<16x128xf32> to vector<1x128xf32>
    %355 = vector.extract_strided_slice %5 {offsets = [7, 0], sizes = [1, 128], strides = [1, 1]} : vector<16x128xf32> to vector<1x128xf32>
    %356 = arith.mulf %352, %354 : vector<1x128xf32>
    %357 = arith.mulf %353, %355 : vector<1x128xf32>
    %358 = arith.addf %356, %357 : vector<1x128xf32>
    %359 = arith.mulf %353, %354 : vector<1x128xf32>
    %360 = arith.mulf %352, %355 : vector<1x128xf32>
    %361 = arith.subf %359, %360 : vector<1x128xf32>
    %362 = arith.addf %348, %358 : vector<1x128xf32>
    %363 = arith.addf %351, %361 : vector<1x128xf32>
    %364 = vector.extract_strided_slice %4 {offsets = [9, 0], sizes = [1, 128], strides = [1, 1]} : vector<16x128xf32> to vector<1x128xf32>
    %365 = vector.extract_strided_slice %5 {offsets = [9, 0], sizes = [1, 128], strides = [1, 1]} : vector<16x128xf32> to vector<1x128xf32>
    %366 = vector.extract_strided_slice %4 {offsets = [11, 0], sizes = [1, 128], strides = [1, 1]} : vector<16x128xf32> to vector<1x128xf32>
    %367 = vector.extract_strided_slice %5 {offsets = [11, 0], sizes = [1, 128], strides = [1, 1]} : vector<16x128xf32> to vector<1x128xf32>
    %368 = arith.mulf %364, %366 : vector<1x128xf32>
    %369 = arith.mulf %365, %367 : vector<1x128xf32>
    %370 = arith.addf %368, %369 : vector<1x128xf32>
    %371 = arith.mulf %365, %366 : vector<1x128xf32>
    %372 = arith.mulf %364, %367 : vector<1x128xf32>
    %373 = arith.subf %371, %372 : vector<1x128xf32>
    %374 = arith.addf %362, %370 : vector<1x128xf32>
    %375 = arith.addf %363, %373 : vector<1x128xf32>
    %376 = vector.extract_strided_slice %4 {offsets = [13, 0], sizes = [1, 128], strides = [1, 1]} : vector<16x128xf32> to vector<1x128xf32>
    %377 = vector.extract_strided_slice %5 {offsets = [13, 0], sizes = [1, 128], strides = [1, 1]} : vector<16x128xf32> to vector<1x128xf32>
    %378 = vector.extract_strided_slice %4 {offsets = [15, 0], sizes = [1, 128], strides = [1, 1]} : vector<16x128xf32> to vector<1x128xf32>
    %379 = vector.extract_strided_slice %5 {offsets = [15, 0], sizes = [1, 128], strides = [1, 1]} : vector<16x128xf32> to vector<1x128xf32>
    %380 = arith.mulf %376, %378 : vector<1x128xf32>
    %381 = arith.mulf %377, %379 : vector<1x128xf32>
    %382 = arith.addf %380, %381 : vector<1x128xf32>
    %383 = arith.mulf %377, %378 : vector<1x128xf32>
    %384 = arith.mulf %376, %379 : vector<1x128xf32>
    %385 = arith.subf %383, %384 : vector<1x128xf32>
    %386 = arith.addf %374, %382 : vector<1x128xf32>
    %387 = arith.addf %375, %385 : vector<1x128xf32>
    %c7 = arith.constant 7 : index
    %c0_20 = arith.constant 0 : index
    %388 = vector.load %arg4[%c7, %c0_20] : memref<32x128xf32, #tpu.memory_space<vmem>>, vector<1x128xf32>
    tpu.vector_store %arg4[%c7, %c0_20], %386 {strides = array<i32>} : memref<32x128xf32, #tpu.memory_space<vmem>>, vector<1x128xf32>,
    %c23 = arith.constant 23 : index
    %c0_21 = arith.constant 0 : index
    %389 = vector.load %arg4[%c23, %c0_21] : memref<32x128xf32, #tpu.memory_space<vmem>>, vector<1x128xf32>
    tpu.vector_store %arg4[%c23, %c0_21], %387 {strides = array<i32>} : memref<32x128xf32, #tpu.memory_space<vmem>>, vector<1x128xf32>,
    %390 = vector.extract_strided_slice %4 {offsets = [2, 0], sizes = [1, 128], strides = [1, 1]} : vector<16x128xf32> to vector<1x128xf32>
    %391 = vector.extract_strided_slice %5 {offsets = [2, 0], sizes = [1, 128], strides = [1, 1]} : vector<16x128xf32> to vector<1x128xf32>
    %392 = vector.extract_strided_slice %4 {offsets = [0, 0], sizes = [1, 128], strides = [1, 1]} : vector<16x128xf32> to vector<1x128xf32>
    %393 = vector.extract_strided_slice %5 {offsets = [0, 0], sizes = [1, 128], strides = [1, 1]} : vector<16x128xf32> to vector<1x128xf32>
    %394 = arith.mulf %390, %392 : vector<1x128xf32>
    %395 = arith.mulf %391, %393 : vector<1x128xf32>
    %396 = arith.addf %394, %395 : vector<1x128xf32>
    %397 = arith.mulf %391, %392 : vector<1x128xf32>
    %398 = arith.mulf %390, %393 : vector<1x128xf32>
    %399 = arith.subf %397, %398 : vector<1x128xf32>
    %400 = vector.extract_strided_slice %4 {offsets = [6, 0], sizes = [1, 128], strides = [1, 1]} : vector<16x128xf32> to vector<1x128xf32>
    %401 = vector.extract_strided_slice %5 {offsets = [6, 0], sizes = [1, 128], strides = [1, 1]} : vector<16x128xf32> to vector<1x128xf32>
    %402 = vector.extract_strided_slice %4 {offsets = [4, 0], sizes = [1, 128], strides = [1, 1]} : vector<16x128xf32> to vector<1x128xf32>
    %403 = vector.extract_strided_slice %5 {offsets = [4, 0], sizes = [1, 128], strides = [1, 1]} : vector<16x128xf32> to vector<1x128xf32>
    %404 = arith.mulf %400, %402 : vector<1x128xf32>
    %405 = arith.mulf %401, %403 : vector<1x128xf32>
    %406 = arith.addf %404, %405 : vector<1x128xf32>
    %407 = arith.mulf %401, %402 : vector<1x128xf32>
    %408 = arith.mulf %400, %403 : vector<1x128xf32>
    %409 = arith.subf %407, %408 : vector<1x128xf32>
    %410 = arith.addf %396, %406 : vector<1x128xf32>
    %411 = arith.addf %399, %409 : vector<1x128xf32>
    %412 = vector.extract_strided_slice %4 {offsets = [10, 0], sizes = [1, 128], strides = [1, 1]} : vector<16x128xf32> to vector<1x128xf32>
    %413 = vector.extract_strided_slice %5 {offsets = [10, 0], sizes = [1, 128], strides = [1, 1]} : vector<16x128xf32> to vector<1x128xf32>
    %414 = vector.extract_strided_slice %4 {offsets = [8, 0], sizes = [1, 128], strides = [1, 1]} : vector<16x128xf32> to vector<1x128xf32>
    %415 = vector.extract_strided_slice %5 {offsets = [8, 0], sizes = [1, 128], strides = [1, 1]} : vector<16x128xf32> to vector<1x128xf32>
    %416 = arith.mulf %412, %414 : vector<1x128xf32>
    %417 = arith.mulf %413, %415 : vector<1x128xf32>
    %418 = arith.addf %416, %417 : vector<1x128xf32>
    %419 = arith.mulf %413, %414 : vector<1x128xf32>
    %420 = arith.mulf %412, %415 : vector<1x128xf32>
    %421 = arith.subf %419, %420 : vector<1x128xf32>
    %422 = arith.addf %410, %418 : vector<1x128xf32>
    %423 = arith.addf %411, %421 : vector<1x128xf32>
    %424 = vector.extract_strided_slice %4 {offsets = [14, 0], sizes = [1, 128], strides = [1, 1]} : vector<16x128xf32> to vector<1x128xf32>
    %425 = vector.extract_strided_slice %5 {offsets = [14, 0], sizes = [1, 128], strides = [1, 1]} : vector<16x128xf32> to vector<1x128xf32>
    %426 = vector.extract_strided_slice %4 {offsets = [12, 0], sizes = [1, 128], strides = [1, 1]} : vector<16x128xf32> to vector<1x128xf32>
    %427 = vector.extract_strided_slice %5 {offsets = [12, 0], sizes = [1, 128], strides = [1, 1]} : vector<16x128xf32> to vector<1x128xf32>
    %428 = arith.mulf %424, %426 : vector<1x128xf32>
    %429 = arith.mulf %425, %427 : vector<1x128xf32>
    %430 = arith.addf %428, %429 : vector<1x128xf32>
    %431 = arith.mulf %425, %426 : vector<1x128xf32>
    %432 = arith.mulf %424, %427 : vector<1x128xf32>
    %433 = arith.subf %431, %432 : vector<1x128xf32>
    %434 = arith.addf %422, %430 : vector<1x128xf32>
    %435 = arith.addf %423, %433 : vector<1x128xf32>
    %c8 = arith.constant 8 : index
    %c0_22 = arith.constant 0 : index
    %436 = vector.load %arg4[%c8, %c0_22] : memref<32x128xf32, #tpu.memory_space<vmem>>, vector<1x128xf32>
    tpu.vector_store %arg4[%c8, %c0_22], %434 {strides = array<i32>} : memref<32x128xf32, #tpu.memory_space<vmem>>, vector<1x128xf32>,
    %c24 = arith.constant 24 : index
    %c0_23 = arith.constant 0 : index
    %437 = vector.load %arg4[%c24, %c0_23] : memref<32x128xf32, #tpu.memory_space<vmem>>, vector<1x128xf32>
    tpu.vector_store %arg4[%c24, %c0_23], %435 {strides = array<i32>} : memref<32x128xf32, #tpu.memory_space<vmem>>, vector<1x128xf32>,
    %438 = vector.extract_strided_slice %4 {offsets = [2, 0], sizes = [1, 128], strides = [1, 1]} : vector<16x128xf32> to vector<1x128xf32>
    %439 = vector.extract_strided_slice %5 {offsets = [2, 0], sizes = [1, 128], strides = [1, 1]} : vector<16x128xf32> to vector<1x128xf32>
    %440 = vector.extract_strided_slice %4 {offsets = [1, 0], sizes = [1, 128], strides = [1, 1]} : vector<16x128xf32> to vector<1x128xf32>
    %441 = vector.extract_strided_slice %5 {offsets = [1, 0], sizes = [1, 128], strides = [1, 1]} : vector<16x128xf32> to vector<1x128xf32>
    %442 = arith.mulf %438, %440 : vector<1x128xf32>
    %443 = arith.mulf %439, %441 : vector<1x128xf32>
    %444 = arith.addf %442, %443 : vector<1x128xf32>
    %445 = arith.mulf %439, %440 : vector<1x128xf32>
    %446 = arith.mulf %438, %441 : vector<1x128xf32>
    %447 = arith.subf %445, %446 : vector<1x128xf32>
    %448 = vector.extract_strided_slice %4 {offsets = [6, 0], sizes = [1, 128], strides = [1, 1]} : vector<16x128xf32> to vector<1x128xf32>
    %449 = vector.extract_strided_slice %5 {offsets = [6, 0], sizes = [1, 128], strides = [1, 1]} : vector<16x128xf32> to vector<1x128xf32>
    %450 = vector.extract_strided_slice %4 {offsets = [5, 0], sizes = [1, 128], strides = [1, 1]} : vector<16x128xf32> to vector<1x128xf32>
    %451 = vector.extract_strided_slice %5 {offsets = [5, 0], sizes = [1, 128], strides = [1, 1]} : vector<16x128xf32> to vector<1x128xf32>
    %452 = arith.mulf %448, %450 : vector<1x128xf32>
    %453 = arith.mulf %449, %451 : vector<1x128xf32>
    %454 = arith.addf %452, %453 : vector<1x128xf32>
    %455 = arith.mulf %449, %450 : vector<1x128xf32>
    %456 = arith.mulf %448, %451 : vector<1x128xf32>
    %457 = arith.subf %455, %456 : vector<1x128xf32>
    %458 = arith.addf %444, %454 : vector<1x128xf32>
    %459 = arith.addf %447, %457 : vector<1x128xf32>
    %460 = vector.extract_strided_slice %4 {offsets = [10, 0], sizes = [1, 128], strides = [1, 1]} : vector<16x128xf32> to vector<1x128xf32>
    %461 = vector.extract_strided_slice %5 {offsets = [10, 0], sizes = [1, 128], strides = [1, 1]} : vector<16x128xf32> to vector<1x128xf32>
    %462 = vector.extract_strided_slice %4 {offsets = [9, 0], sizes = [1, 128], strides = [1, 1]} : vector<16x128xf32> to vector<1x128xf32>
    %463 = vector.extract_strided_slice %5 {offsets = [9, 0], sizes = [1, 128], strides = [1, 1]} : vector<16x128xf32> to vector<1x128xf32>
    %464 = arith.mulf %460, %462 : vector<1x128xf32>
    %465 = arith.mulf %461, %463 : vector<1x128xf32>
    %466 = arith.addf %464, %465 : vector<1x128xf32>
    %467 = arith.mulf %461, %462 : vector<1x128xf32>
    %468 = arith.mulf %460, %463 : vector<1x128xf32>
    %469 = arith.subf %467, %468 : vector<1x128xf32>
    %470 = arith.addf %458, %466 : vector<1x128xf32>
    %471 = arith.addf %459, %469 : vector<1x128xf32>
    %472 = vector.extract_strided_slice %4 {offsets = [14, 0], sizes = [1, 128], strides = [1, 1]} : vector<16x128xf32> to vector<1x128xf32>
    %473 = vector.extract_strided_slice %5 {offsets = [14, 0], sizes = [1, 128], strides = [1, 1]} : vector<16x128xf32> to vector<1x128xf32>
    %474 = vector.extract_strided_slice %4 {offsets = [13, 0], sizes = [1, 128], strides = [1, 1]} : vector<16x128xf32> to vector<1x128xf32>
    %475 = vector.extract_strided_slice %5 {offsets = [13, 0], sizes = [1, 128], strides = [1, 1]} : vector<16x128xf32> to vector<1x128xf32>
    %476 = arith.mulf %472, %474 : vector<1x128xf32>
    %477 = arith.mulf %473, %475 : vector<1x128xf32>
    %478 = arith.addf %476, %477 : vector<1x128xf32>
    %479 = arith.mulf %473, %474 : vector<1x128xf32>
    %480 = arith.mulf %472, %475 : vector<1x128xf32>
    %481 = arith.subf %479, %480 : vector<1x128xf32>
    %482 = arith.addf %470, %478 : vector<1x128xf32>
    %483 = arith.addf %471, %481 : vector<1x128xf32>
    %c9 = arith.constant 9 : index
    %c0_24 = arith.constant 0 : index
    %484 = vector.load %arg4[%c9, %c0_24] : memref<32x128xf32, #tpu.memory_space<vmem>>, vector<1x128xf32>
    tpu.vector_store %arg4[%c9, %c0_24], %482 {strides = array<i32>} : memref<32x128xf32, #tpu.memory_space<vmem>>, vector<1x128xf32>,
    %c25 = arith.constant 25 : index
    %c0_25 = arith.constant 0 : index
    %485 = vector.load %arg4[%c25, %c0_25] : memref<32x128xf32, #tpu.memory_space<vmem>>, vector<1x128xf32>
    tpu.vector_store %arg4[%c25, %c0_25], %483 {strides = array<i32>} : memref<32x128xf32, #tpu.memory_space<vmem>>, vector<1x128xf32>,
    %486 = vector.extract_strided_slice %4 {offsets = [2, 0], sizes = [1, 128], strides = [1, 1]} : vector<16x128xf32> to vector<1x128xf32>
    %487 = vector.extract_strided_slice %5 {offsets = [2, 0], sizes = [1, 128], strides = [1, 1]} : vector<16x128xf32> to vector<1x128xf32>
    %488 = vector.extract_strided_slice %4 {offsets = [2, 0], sizes = [1, 128], strides = [1, 1]} : vector<16x128xf32> to vector<1x128xf32>
    %489 = vector.extract_strided_slice %5 {offsets = [2, 0], sizes = [1, 128], strides = [1, 1]} : vector<16x128xf32> to vector<1x128xf32>
    %490 = arith.mulf %486, %488 : vector<1x128xf32>
    %491 = arith.mulf %487, %489 : vector<1x128xf32>
    %492 = arith.addf %490, %491 : vector<1x128xf32>
    %493 = arith.mulf %487, %488 : vector<1x128xf32>
    %494 = arith.mulf %486, %489 : vector<1x128xf32>
    %495 = arith.subf %493, %494 : vector<1x128xf32>
    %496 = vector.extract_strided_slice %4 {offsets = [6, 0], sizes = [1, 128], strides = [1, 1]} : vector<16x128xf32> to vector<1x128xf32>
    %497 = vector.extract_strided_slice %5 {offsets = [6, 0], sizes = [1, 128], strides = [1, 1]} : vector<16x128xf32> to vector<1x128xf32>
    %498 = vector.extract_strided_slice %4 {offsets = [6, 0], sizes = [1, 128], strides = [1, 1]} : vector<16x128xf32> to vector<1x128xf32>
    %499 = vector.extract_strided_slice %5 {offsets = [6, 0], sizes = [1, 128], strides = [1, 1]} : vector<16x128xf32> to vector<1x128xf32>
    %500 = arith.mulf %496, %498 : vector<1x128xf32>
    %501 = arith.mulf %497, %499 : vector<1x128xf32>
    %502 = arith.addf %500, %501 : vector<1x128xf32>
    %503 = arith.mulf %497, %498 : vector<1x128xf32>
    %504 = arith.mulf %496, %499 : vector<1x128xf32>
    %505 = arith.subf %503, %504 : vector<1x128xf32>
    %506 = arith.addf %492, %502 : vector<1x128xf32>
    %507 = arith.addf %495, %505 : vector<1x128xf32>
    %508 = vector.extract_strided_slice %4 {offsets = [10, 0], sizes = [1, 128], strides = [1, 1]} : vector<16x128xf32> to vector<1x128xf32>
    %509 = vector.extract_strided_slice %5 {offsets = [10, 0], sizes = [1, 128], strides = [1, 1]} : vector<16x128xf32> to vector<1x128xf32>
    %510 = vector.extract_strided_slice %4 {offsets = [10, 0], sizes = [1, 128], strides = [1, 1]} : vector<16x128xf32> to vector<1x128xf32>
    %511 = vector.extract_strided_slice %5 {offsets = [10, 0], sizes = [1, 128], strides = [1, 1]} : vector<16x128xf32> to vector<1x128xf32>
    %512 = arith.mulf %508, %510 : vector<1x128xf32>
    %513 = arith.mulf %509, %511 : vector<1x128xf32>
    %514 = arith.addf %512, %513 : vector<1x128xf32>
    %515 = arith.mulf %509, %510 : vector<1x128xf32>
    %516 = arith.mulf %508, %511 : vector<1x128xf32>
    %517 = arith.subf %515, %516 : vector<1x128xf32>
    %518 = arith.addf %506, %514 : vector<1x128xf32>
    %519 = arith.addf %507, %517 : vector<1x128xf32>
    %520 = vector.extract_strided_slice %4 {offsets = [14, 0], sizes = [1, 128], strides = [1, 1]} : vector<16x128xf32> to vector<1x128xf32>
    %521 = vector.extract_strided_slice %5 {offsets = [14, 0], sizes = [1, 128], strides = [1, 1]} : vector<16x128xf32> to vector<1x128xf32>
    %522 = vector.extract_strided_slice %4 {offsets = [14, 0], sizes = [1, 128], strides = [1, 1]} : vector<16x128xf32> to vector<1x128xf32>
    %523 = vector.extract_strided_slice %5 {offsets = [14, 0], sizes = [1, 128], strides = [1, 1]} : vector<16x128xf32> to vector<1x128xf32>
    %524 = arith.mulf %520, %522 : vector<1x128xf32>
    %525 = arith.mulf %521, %523 : vector<1x128xf32>
    %526 = arith.addf %524, %525 : vector<1x128xf32>
    %527 = arith.mulf %521, %522 : vector<1x128xf32>
    %528 = arith.mulf %520, %523 : vector<1x128xf32>
    %529 = arith.subf %527, %528 : vector<1x128xf32>
    %530 = arith.addf %518, %526 : vector<1x128xf32>
    %531 = arith.addf %519, %529 : vector<1x128xf32>
    %c10 = arith.constant 10 : index
    %c0_26 = arith.constant 0 : index
    %532 = vector.load %arg4[%c10, %c0_26] : memref<32x128xf32, #tpu.memory_space<vmem>>, vector<1x128xf32>
    tpu.vector_store %arg4[%c10, %c0_26], %530 {strides = array<i32>} : memref<32x128xf32, #tpu.memory_space<vmem>>, vector<1x128xf32>,
    %c26 = arith.constant 26 : index
    %c0_27 = arith.constant 0 : index
    %533 = vector.load %arg4[%c26, %c0_27] : memref<32x128xf32, #tpu.memory_space<vmem>>, vector<1x128xf32>
    tpu.vector_store %arg4[%c26, %c0_27], %531 {strides = array<i32>} : memref<32x128xf32, #tpu.memory_space<vmem>>, vector<1x128xf32>,
    %534 = vector.extract_strided_slice %4 {offsets = [2, 0], sizes = [1, 128], strides = [1, 1]} : vector<16x128xf32> to vector<1x128xf32>
    %535 = vector.extract_strided_slice %5 {offsets = [2, 0], sizes = [1, 128], strides = [1, 1]} : vector<16x128xf32> to vector<1x128xf32>
    %536 = vector.extract_strided_slice %4 {offsets = [3, 0], sizes = [1, 128], strides = [1, 1]} : vector<16x128xf32> to vector<1x128xf32>
    %537 = vector.extract_strided_slice %5 {offsets = [3, 0], sizes = [1, 128], strides = [1, 1]} : vector<16x128xf32> to vector<1x128xf32>
    %538 = arith.mulf %534, %536 : vector<1x128xf32>
    %539 = arith.mulf %535, %537 : vector<1x128xf32>
    %540 = arith.addf %538, %539 : vector<1x128xf32>
    %541 = arith.mulf %535, %536 : vector<1x128xf32>
    %542 = arith.mulf %534, %537 : vector<1x128xf32>
    %543 = arith.subf %541, %542 : vector<1x128xf32>
    %544 = vector.extract_strided_slice %4 {offsets = [6, 0], sizes = [1, 128], strides = [1, 1]} : vector<16x128xf32> to vector<1x128xf32>
    %545 = vector.extract_strided_slice %5 {offsets = [6, 0], sizes = [1, 128], strides = [1, 1]} : vector<16x128xf32> to vector<1x128xf32>
    %546 = vector.extract_strided_slice %4 {offsets = [7, 0], sizes = [1, 128], strides = [1, 1]} : vector<16x128xf32> to vector<1x128xf32>
    %547 = vector.extract_strided_slice %5 {offsets = [7, 0], sizes = [1, 128], strides = [1, 1]} : vector<16x128xf32> to vector<1x128xf32>
    %548 = arith.mulf %544, %546 : vector<1x128xf32>
    %549 = arith.mulf %545, %547 : vector<1x128xf32>
    %550 = arith.addf %548, %549 : vector<1x128xf32>
    %551 = arith.mulf %545, %546 : vector<1x128xf32>
    %552 = arith.mulf %544, %547 : vector<1x128xf32>
    %553 = arith.subf %551, %552 : vector<1x128xf32>
    %554 = arith.addf %540, %550 : vector<1x128xf32>
    %555 = arith.addf %543, %553 : vector<1x128xf32>
    %556 = vector.extract_strided_slice %4 {offsets = [10, 0], sizes = [1, 128], strides = [1, 1]} : vector<16x128xf32> to vector<1x128xf32>
    %557 = vector.extract_strided_slice %5 {offsets = [10, 0], sizes = [1, 128], strides = [1, 1]} : vector<16x128xf32> to vector<1x128xf32>
    %558 = vector.extract_strided_slice %4 {offsets = [11, 0], sizes = [1, 128], strides = [1, 1]} : vector<16x128xf32> to vector<1x128xf32>
    %559 = vector.extract_strided_slice %5 {offsets = [11, 0], sizes = [1, 128], strides = [1, 1]} : vector<16x128xf32> to vector<1x128xf32>
    %560 = arith.mulf %556, %558 : vector<1x128xf32>
    %561 = arith.mulf %557, %559 : vector<1x128xf32>
    %562 = arith.addf %560, %561 : vector<1x128xf32>
    %563 = arith.mulf %557, %558 : vector<1x128xf32>
    %564 = arith.mulf %556, %559 : vector<1x128xf32>
    %565 = arith.subf %563, %564 : vector<1x128xf32>
    %566 = arith.addf %554, %562 : vector<1x128xf32>
    %567 = arith.addf %555, %565 : vector<1x128xf32>
    %568 = vector.extract_strided_slice %4 {offsets = [14, 0], sizes = [1, 128], strides = [1, 1]} : vector<16x128xf32> to vector<1x128xf32>
    %569 = vector.extract_strided_slice %5 {offsets = [14, 0], sizes = [1, 128], strides = [1, 1]} : vector<16x128xf32> to vector<1x128xf32>
    %570 = vector.extract_strided_slice %4 {offsets = [15, 0], sizes = [1, 128], strides = [1, 1]} : vector<16x128xf32> to vector<1x128xf32>
    %571 = vector.extract_strided_slice %5 {offsets = [15, 0], sizes = [1, 128], strides = [1, 1]} : vector<16x128xf32> to vector<1x128xf32>
    %572 = arith.mulf %568, %570 : vector<1x128xf32>
    %573 = arith.mulf %569, %571 : vector<1x128xf32>
    %574 = arith.addf %572, %573 : vector<1x128xf32>
    %575 = arith.mulf %569, %570 : vector<1x128xf32>
    %576 = arith.mulf %568, %571 : vector<1x128xf32>
    %577 = arith.subf %575, %576 : vector<1x128xf32>
    %578 = arith.addf %566, %574 : vector<1x128xf32>
    %579 = arith.addf %567, %577 : vector<1x128xf32>
    %c11 = arith.constant 11 : index
    %c0_28 = arith.constant 0 : index
    %580 = vector.load %arg4[%c11, %c0_28] : memref<32x128xf32, #tpu.memory_space<vmem>>, vector<1x128xf32>
    tpu.vector_store %arg4[%c11, %c0_28], %578 {strides = array<i32>} : memref<32x128xf32, #tpu.memory_space<vmem>>, vector<1x128xf32>,
    %c27 = arith.constant 27 : index
    %c0_29 = arith.constant 0 : index
    %581 = vector.load %arg4[%c27, %c0_29] : memref<32x128xf32, #tpu.memory_space<vmem>>, vector<1x128xf32>
    tpu.vector_store %arg4[%c27, %c0_29], %579 {strides = array<i32>} : memref<32x128xf32, #tpu.memory_space<vmem>>, vector<1x128xf32>,
    %582 = vector.extract_strided_slice %4 {offsets = [3, 0], sizes = [1, 128], strides = [1, 1]} : vector<16x128xf32> to vector<1x128xf32>
    %583 = vector.extract_strided_slice %5 {offsets = [3, 0], sizes = [1, 128], strides = [1, 1]} : vector<16x128xf32> to vector<1x128xf32>
    %584 = vector.extract_strided_slice %4 {offsets = [0, 0], sizes = [1, 128], strides = [1, 1]} : vector<16x128xf32> to vector<1x128xf32>
    %585 = vector.extract_strided_slice %5 {offsets = [0, 0], sizes = [1, 128], strides = [1, 1]} : vector<16x128xf32> to vector<1x128xf32>
    %586 = arith.mulf %582, %584 : vector<1x128xf32>
    %587 = arith.mulf %583, %585 : vector<1x128xf32>
    %588 = arith.addf %586, %587 : vector<1x128xf32>
    %589 = arith.mulf %583, %584 : vector<1x128xf32>
    %590 = arith.mulf %582, %585 : vector<1x128xf32>
    %591 = arith.subf %589, %590 : vector<1x128xf32>
    %592 = vector.extract_strided_slice %4 {offsets = [7, 0], sizes = [1, 128], strides = [1, 1]} : vector<16x128xf32> to vector<1x128xf32>
    %593 = vector.extract_strided_slice %5 {offsets = [7, 0], sizes = [1, 128], strides = [1, 1]} : vector<16x128xf32> to vector<1x128xf32>
    %594 = vector.extract_strided_slice %4 {offsets = [4, 0], sizes = [1, 128], strides = [1, 1]} : vector<16x128xf32> to vector<1x128xf32>
    %595 = vector.extract_strided_slice %5 {offsets = [4, 0], sizes = [1, 128], strides = [1, 1]} : vector<16x128xf32> to vector<1x128xf32>
    %596 = arith.mulf %592, %594 : vector<1x128xf32>
    %597 = arith.mulf %593, %595 : vector<1x128xf32>
    %598 = arith.addf %596, %597 : vector<1x128xf32>
    %599 = arith.mulf %593, %594 : vector<1x128xf32>
    %600 = arith.mulf %592, %595 : vector<1x128xf32>
    %601 = arith.subf %599, %600 : vector<1x128xf32>
    %602 = arith.addf %588, %598 : vector<1x128xf32>
    %603 = arith.addf %591, %601 : vector<1x128xf32>
    %604 = vector.extract_strided_slice %4 {offsets = [11, 0], sizes = [1, 128], strides = [1, 1]} : vector<16x128xf32> to vector<1x128xf32>
    %605 = vector.extract_strided_slice %5 {offsets = [11, 0], sizes = [1, 128], strides = [1, 1]} : vector<16x128xf32> to vector<1x128xf32>
    %606 = vector.extract_strided_slice %4 {offsets = [8, 0], sizes = [1, 128], strides = [1, 1]} : vector<16x128xf32> to vector<1x128xf32>
    %607 = vector.extract_strided_slice %5 {offsets = [8, 0], sizes = [1, 128], strides = [1, 1]} : vector<16x128xf32> to vector<1x128xf32>
    %608 = arith.mulf %604, %606 : vector<1x128xf32>
    %609 = arith.mulf %605, %607 : vector<1x128xf32>
    %610 = arith.addf %608, %609 : vector<1x128xf32>
    %611 = arith.mulf %605, %606 : vector<1x128xf32>
    %612 = arith.mulf %604, %607 : vector<1x128xf32>
    %613 = arith.subf %611, %612 : vector<1x128xf32>
    %614 = arith.addf %602, %610 : vector<1x128xf32>
    %615 = arith.addf %603, %613 : vector<1x128xf32>
    %616 = vector.extract_strided_slice %4 {offsets = [15, 0], sizes = [1, 128], strides = [1, 1]} : vector<16x128xf32> to vector<1x128xf32>
    %617 = vector.extract_strided_slice %5 {offsets = [15, 0], sizes = [1, 128], strides = [1, 1]} : vector<16x128xf32> to vector<1x128xf32>
    %618 = vector.extract_strided_slice %4 {offsets = [12, 0], sizes = [1, 128], strides = [1, 1]} : vector<16x128xf32> to vector<1x128xf32>
    %619 = vector.extract_strided_slice %5 {offsets = [12, 0], sizes = [1, 128], strides = [1, 1]} : vector<16x128xf32> to vector<1x128xf32>
    %620 = arith.mulf %616, %618 : vector<1x128xf32>
    %621 = arith.mulf %617, %619 : vector<1x128xf32>
    %622 = arith.addf %620, %621 : vector<1x128xf32>
    %623 = arith.mulf %617, %618 : vector<1x128xf32>
    %624 = arith.mulf %616, %619 : vector<1x128xf32>
    %625 = arith.subf %623, %624 : vector<1x128xf32>
    %626 = arith.addf %614, %622 : vector<1x128xf32>
    %627 = arith.addf %615, %625 : vector<1x128xf32>
    %c12 = arith.constant 12 : index
    %c0_30 = arith.constant 0 : index
    %628 = vector.load %arg4[%c12, %c0_30] : memref<32x128xf32, #tpu.memory_space<vmem>>, vector<1x128xf32>
    tpu.vector_store %arg4[%c12, %c0_30], %626 {strides = array<i32>} : memref<32x128xf32, #tpu.memory_space<vmem>>, vector<1x128xf32>,
    %c28 = arith.constant 28 : index
    %c0_31 = arith.constant 0 : index
    %629 = vector.load %arg4[%c28, %c0_31] : memref<32x128xf32, #tpu.memory_space<vmem>>, vector<1x128xf32>
    tpu.vector_store %arg4[%c28, %c0_31], %627 {strides = array<i32>} : memref<32x128xf32, #tpu.memory_space<vmem>>, vector<1x128xf32>,
    %630 = vector.extract_strided_slice %4 {offsets = [3, 0], sizes = [1, 128], strides = [1, 1]} : vector<16x128xf32> to vector<1x128xf32>
    %631 = vector.extract_strided_slice %5 {offsets = [3, 0], sizes = [1, 128], strides = [1, 1]} : vector<16x128xf32> to vector<1x128xf32>
    %632 = vector.extract_strided_slice %4 {offsets = [1, 0], sizes = [1, 128], strides = [1, 1]} : vector<16x128xf32> to vector<1x128xf32>
    %633 = vector.extract_strided_slice %5 {offsets = [1, 0], sizes = [1, 128], strides = [1, 1]} : vector<16x128xf32> to vector<1x128xf32>
    %634 = arith.mulf %630, %632 : vector<1x128xf32>
    %635 = arith.mulf %631, %633 : vector<1x128xf32>
    %636 = arith.addf %634, %635 : vector<1x128xf32>
    %637 = arith.mulf %631, %632 : vector<1x128xf32>
    %638 = arith.mulf %630, %633 : vector<1x128xf32>
    %639 = arith.subf %637, %638 : vector<1x128xf32>
    %640 = vector.extract_strided_slice %4 {offsets = [7, 0], sizes = [1, 128], strides = [1, 1]} : vector<16x128xf32> to vector<1x128xf32>
    %641 = vector.extract_strided_slice %5 {offsets = [7, 0], sizes = [1, 128], strides = [1, 1]} : vector<16x128xf32> to vector<1x128xf32>
    %642 = vector.extract_strided_slice %4 {offsets = [5, 0], sizes = [1, 128], strides = [1, 1]} : vector<16x128xf32> to vector<1x128xf32>
    %643 = vector.extract_strided_slice %5 {offsets = [5, 0], sizes = [1, 128], strides = [1, 1]} : vector<16x128xf32> to vector<1x128xf32>
    %644 = arith.mulf %640, %642 : vector<1x128xf32>
    %645 = arith.mulf %641, %643 : vector<1x128xf32>
    %646 = arith.addf %644, %645 : vector<1x128xf32>
    %647 = arith.mulf %641, %642 : vector<1x128xf32>
    %648 = arith.mulf %640, %643 : vector<1x128xf32>
    %649 = arith.subf %647, %648 : vector<1x128xf32>
    %650 = arith.addf %636, %646 : vector<1x128xf32>
    %651 = arith.addf %639, %649 : vector<1x128xf32>
    %652 = vector.extract_strided_slice %4 {offsets = [11, 0], sizes = [1, 128], strides = [1, 1]} : vector<16x128xf32> to vector<1x128xf32>
    %653 = vector.extract_strided_slice %5 {offsets = [11, 0], sizes = [1, 128], strides = [1, 1]} : vector<16x128xf32> to vector<1x128xf32>
    %654 = vector.extract_strided_slice %4 {offsets = [9, 0], sizes = [1, 128], strides = [1, 1]} : vector<16x128xf32> to vector<1x128xf32>
    %655 = vector.extract_strided_slice %5 {offsets = [9, 0], sizes = [1, 128], strides = [1, 1]} : vector<16x128xf32> to vector<1x128xf32>
    %656 = arith.mulf %652, %654 : vector<1x128xf32>
    %657 = arith.mulf %653, %655 : vector<1x128xf32>
    %658 = arith.addf %656, %657 : vector<1x128xf32>
    %659 = arith.mulf %653, %654 : vector<1x128xf32>
    %660 = arith.mulf %652, %655 : vector<1x128xf32>
    %661 = arith.subf %659, %660 : vector<1x128xf32>
    %662 = arith.addf %650, %658 : vector<1x128xf32>
    %663 = arith.addf %651, %661 : vector<1x128xf32>
    %664 = vector.extract_strided_slice %4 {offsets = [15, 0], sizes = [1, 128], strides = [1, 1]} : vector<16x128xf32> to vector<1x128xf32>
    %665 = vector.extract_strided_slice %5 {offsets = [15, 0], sizes = [1, 128], strides = [1, 1]} : vector<16x128xf32> to vector<1x128xf32>
    %666 = vector.extract_strided_slice %4 {offsets = [13, 0], sizes = [1, 128], strides = [1, 1]} : vector<16x128xf32> to vector<1x128xf32>
    %667 = vector.extract_strided_slice %5 {offsets = [13, 0], sizes = [1, 128], strides = [1, 1]} : vector<16x128xf32> to vector<1x128xf32>
    %668 = arith.mulf %664, %666 : vector<1x128xf32>
    %669 = arith.mulf %665, %667 : vector<1x128xf32>
    %670 = arith.addf %668, %669 : vector<1x128xf32>
    %671 = arith.mulf %665, %666 : vector<1x128xf32>
    %672 = arith.mulf %664, %667 : vector<1x128xf32>
    %673 = arith.subf %671, %672 : vector<1x128xf32>
    %674 = arith.addf %662, %670 : vector<1x128xf32>
    %675 = arith.addf %663, %673 : vector<1x128xf32>
    %c13 = arith.constant 13 : index
    %c0_32 = arith.constant 0 : index
    %676 = vector.load %arg4[%c13, %c0_32] : memref<32x128xf32, #tpu.memory_space<vmem>>, vector<1x128xf32>
    tpu.vector_store %arg4[%c13, %c0_32], %674 {strides = array<i32>} : memref<32x128xf32, #tpu.memory_space<vmem>>, vector<1x128xf32>,
    %c29 = arith.constant 29 : index
    %c0_33 = arith.constant 0 : index
    %677 = vector.load %arg4[%c29, %c0_33] : memref<32x128xf32, #tpu.memory_space<vmem>>, vector<1x128xf32>
    tpu.vector_store %arg4[%c29, %c0_33], %675 {strides = array<i32>} : memref<32x128xf32, #tpu.memory_space<vmem>>, vector<1x128xf32>,
    %678 = vector.extract_strided_slice %4 {offsets = [3, 0], sizes = [1, 128], strides = [1, 1]} : vector<16x128xf32> to vector<1x128xf32>
    %679 = vector.extract_strided_slice %5 {offsets = [3, 0], sizes = [1, 128], strides = [1, 1]} : vector<16x128xf32> to vector<1x128xf32>
    %680 = vector.extract_strided_slice %4 {offsets = [2, 0], sizes = [1, 128], strides = [1, 1]} : vector<16x128xf32> to vector<1x128xf32>
    %681 = vector.extract_strided_slice %5 {offsets = [2, 0], sizes = [1, 128], strides = [1, 1]} : vector<16x128xf32> to vector<1x128xf32>
    %682 = arith.mulf %678, %680 : vector<1x128xf32>
    %683 = arith.mulf %679, %681 : vector<1x128xf32>
    %684 = arith.addf %682, %683 : vector<1x128xf32>
    %685 = arith.mulf %679, %680 : vector<1x128xf32>
    %686 = arith.mulf %678, %681 : vector<1x128xf32>
    %687 = arith.subf %685, %686 : vector<1x128xf32>
    %688 = vector.extract_strided_slice %4 {offsets = [7, 0], sizes = [1, 128], strides = [1, 1]} : vector<16x128xf32> to vector<1x128xf32>
    %689 = vector.extract_strided_slice %5 {offsets = [7, 0], sizes = [1, 128], strides = [1, 1]} : vector<16x128xf32> to vector<1x128xf32>
    %690 = vector.extract_strided_slice %4 {offsets = [6, 0], sizes = [1, 128], strides = [1, 1]} : vector<16x128xf32> to vector<1x128xf32>
    %691 = vector.extract_strided_slice %5 {offsets = [6, 0], sizes = [1, 128], strides = [1, 1]} : vector<16x128xf32> to vector<1x128xf32>
    %692 = arith.mulf %688, %690 : vector<1x128xf32>
    %693 = arith.mulf %689, %691 : vector<1x128xf32>
    %694 = arith.addf %692, %693 : vector<1x128xf32>
    %695 = arith.mulf %689, %690 : vector<1x128xf32>
    %696 = arith.mulf %688, %691 : vector<1x128xf32>
    %697 = arith.subf %695, %696 : vector<1x128xf32>
    %698 = arith.addf %684, %694 : vector<1x128xf32>
    %699 = arith.addf %687, %697 : vector<1x128xf32>
    %700 = vector.extract_strided_slice %4 {offsets = [11, 0], sizes = [1, 128], strides = [1, 1]} : vector<16x128xf32> to vector<1x128xf32>
    %701 = vector.extract_strided_slice %5 {offsets = [11, 0], sizes = [1, 128], strides = [1, 1]} : vector<16x128xf32> to vector<1x128xf32>
    %702 = vector.extract_strided_slice %4 {offsets = [10, 0], sizes = [1, 128], strides = [1, 1]} : vector<16x128xf32> to vector<1x128xf32>
    %703 = vector.extract_strided_slice %5 {offsets = [10, 0], sizes = [1, 128], strides = [1, 1]} : vector<16x128xf32> to vector<1x128xf32>
    %704 = arith.mulf %700, %702 : vector<1x128xf32>
    %705 = arith.mulf %701, %703 : vector<1x128xf32>
    %706 = arith.addf %704, %705 : vector<1x128xf32>
    %707 = arith.mulf %701, %702 : vector<1x128xf32>
    %708 = arith.mulf %700, %703 : vector<1x128xf32>
    %709 = arith.subf %707, %708 : vector<1x128xf32>
    %710 = arith.addf %698, %706 : vector<1x128xf32>
    %711 = arith.addf %699, %709 : vector<1x128xf32>
    %712 = vector.extract_strided_slice %4 {offsets = [15, 0], sizes = [1, 128], strides = [1, 1]} : vector<16x128xf32> to vector<1x128xf32>
    %713 = vector.extract_strided_slice %5 {offsets = [15, 0], sizes = [1, 128], strides = [1, 1]} : vector<16x128xf32> to vector<1x128xf32>
    %714 = vector.extract_strided_slice %4 {offsets = [14, 0], sizes = [1, 128], strides = [1, 1]} : vector<16x128xf32> to vector<1x128xf32>
    %715 = vector.extract_strided_slice %5 {offsets = [14, 0], sizes = [1, 128], strides = [1, 1]} : vector<16x128xf32> to vector<1x128xf32>
    %716 = arith.mulf %712, %714 : vector<1x128xf32>
    %717 = arith.mulf %713, %715 : vector<1x128xf32>
    %718 = arith.addf %716, %717 : vector<1x128xf32>
    %719 = arith.mulf %713, %714 : vector<1x128xf32>
    %720 = arith.mulf %712, %715 : vector<1x128xf32>
    %721 = arith.subf %719, %720 : vector<1x128xf32>
    %722 = arith.addf %710, %718 : vector<1x128xf32>
    %723 = arith.addf %711, %721 : vector<1x128xf32>
    %c14 = arith.constant 14 : index
    %c0_34 = arith.constant 0 : index
    %724 = vector.load %arg4[%c14, %c0_34] : memref<32x128xf32, #tpu.memory_space<vmem>>, vector<1x128xf32>
    tpu.vector_store %arg4[%c14, %c0_34], %722 {strides = array<i32>} : memref<32x128xf32, #tpu.memory_space<vmem>>, vector<1x128xf32>,
    %c30 = arith.constant 30 : index
    %c0_35 = arith.constant 0 : index
    %725 = vector.load %arg4[%c30, %c0_35] : memref<32x128xf32, #tpu.memory_space<vmem>>, vector<1x128xf32>
    tpu.vector_store %arg4[%c30, %c0_35], %723 {strides = array<i32>} : memref<32x128xf32, #tpu.memory_space<vmem>>, vector<1x128xf32>,
    %726 = vector.extract_strided_slice %4 {offsets = [3, 0], sizes = [1, 128], strides = [1, 1]} : vector<16x128xf32> to vector<1x128xf32>
    %727 = vector.extract_strided_slice %5 {offsets = [3, 0], sizes = [1, 128], strides = [1, 1]} : vector<16x128xf32> to vector<1x128xf32>
    %728 = vector.extract_strided_slice %4 {offsets = [3, 0], sizes = [1, 128], strides = [1, 1]} : vector<16x128xf32> to vector<1x128xf32>
    %729 = vector.extract_strided_slice %5 {offsets = [3, 0], sizes = [1, 128], strides = [1, 1]} : vector<16x128xf32> to vector<1x128xf32>
    %730 = arith.mulf %726, %728 : vector<1x128xf32>
    %731 = arith.mulf %727, %729 : vector<1x128xf32>
    %732 = arith.addf %730, %731 : vector<1x128xf32>
    %733 = arith.mulf %727, %728 : vector<1x128xf32>
    %734 = arith.mulf %726, %729 : vector<1x128xf32>
    %735 = arith.subf %733, %734 : vector<1x128xf32>
    %736 = vector.extract_strided_slice %4 {offsets = [7, 0], sizes = [1, 128], strides = [1, 1]} : vector<16x128xf32> to vector<1x128xf32>
    %737 = vector.extract_strided_slice %5 {offsets = [7, 0], sizes = [1, 128], strides = [1, 1]} : vector<16x128xf32> to vector<1x128xf32>
    %738 = vector.extract_strided_slice %4 {offsets = [7, 0], sizes = [1, 128], strides = [1, 1]} : vector<16x128xf32> to vector<1x128xf32>
    %739 = vector.extract_strided_slice %5 {offsets = [7, 0], sizes = [1, 128], strides = [1, 1]} : vector<16x128xf32> to vector<1x128xf32>
    %740 = arith.mulf %736, %738 : vector<1x128xf32>
    %741 = arith.mulf %737, %739 : vector<1x128xf32>
    %742 = arith.addf %740, %741 : vector<1x128xf32>
    %743 = arith.mulf %737, %738 : vector<1x128xf32>
    %744 = arith.mulf %736, %739 : vector<1x128xf32>
    %745 = arith.subf %743, %744 : vector<1x128xf32>
    %746 = arith.addf %732, %742 : vector<1x128xf32>
    %747 = arith.addf %735, %745 : vector<1x128xf32>
    %748 = vector.extract_strided_slice %4 {offsets = [11, 0], sizes = [1, 128], strides = [1, 1]} : vector<16x128xf32> to vector<1x128xf32>
    %749 = vector.extract_strided_slice %5 {offsets = [11, 0], sizes = [1, 128], strides = [1, 1]} : vector<16x128xf32> to vector<1x128xf32>
    %750 = vector.extract_strided_slice %4 {offsets = [11, 0], sizes = [1, 128], strides = [1, 1]} : vector<16x128xf32> to vector<1x128xf32>
    %751 = vector.extract_strided_slice %5 {offsets = [11, 0], sizes = [1, 128], strides = [1, 1]} : vector<16x128xf32> to vector<1x128xf32>
    %752 = arith.mulf %748, %750 : vector<1x128xf32>
    %753 = arith.mulf %749, %751 : vector<1x128xf32>
    %754 = arith.addf %752, %753 : vector<1x128xf32>
    %755 = arith.mulf %749, %750 : vector<1x128xf32>
    %756 = arith.mulf %748, %751 : vector<1x128xf32>
    %757 = arith.subf %755, %756 : vector<1x128xf32>
    %758 = arith.addf %746, %754 : vector<1x128xf32>
    %759 = arith.addf %747, %757 : vector<1x128xf32>
    %760 = vector.extract_strided_slice %4 {offsets = [15, 0], sizes = [1, 128], strides = [1, 1]} : vector<16x128xf32> to vector<1x128xf32>
    %761 = vector.extract_strided_slice %5 {offsets = [15, 0], sizes = [1, 128], strides = [1, 1]} : vector<16x128xf32> to vector<1x128xf32>
    %762 = vector.extract_strided_slice %4 {offsets = [15, 0], sizes = [1, 128], strides = [1, 1]} : vector<16x128xf32> to vector<1x128xf32>
    %763 = vector.extract_strided_slice %5 {offsets = [15, 0], sizes = [1, 128], strides = [1, 1]} : vector<16x128xf32> to vector<1x128xf32>
    %764 = arith.mulf %760, %762 : vector<1x128xf32>
    %765 = arith.mulf %761, %763 : vector<1x128xf32>
    %766 = arith.addf %764, %765 : vector<1x128xf32>
    %767 = arith.mulf %761, %762 : vector<1x128xf32>
    %768 = arith.mulf %760, %763 : vector<1x128xf32>
    %769 = arith.subf %767, %768 : vector<1x128xf32>
    %770 = arith.addf %758, %766 : vector<1x128xf32>
    %771 = arith.addf %759, %769 : vector<1x128xf32>
    %c15 = arith.constant 15 : index
    %c0_36 = arith.constant 0 : index
    %772 = vector.load %arg4[%c15, %c0_36] : memref<32x128xf32, #tpu.memory_space<vmem>>, vector<1x128xf32>
    tpu.vector_store %arg4[%c15, %c0_36], %770 {strides = array<i32>} : memref<32x128xf32, #tpu.memory_space<vmem>>, vector<1x128xf32>,
    %c31 = arith.constant 31 : index
    %c0_37 = arith.constant 0 : index
    %773 = vector.load %arg4[%c31, %c0_37] : memref<32x128xf32, #tpu.memory_space<vmem>>, vector<1x128xf32>
    tpu.vector_store %arg4[%c31, %c0_37], %771 {strides = array<i32>} : memref<32x128xf32, #tpu.memory_space<vmem>>, vector<1x128xf32>,
    return
  }
  func.func @transform_0(%arg0: i32) -> (i32, i32) {
    %c0_i32 = arith.constant 0 : i32
    %c0_i32_0 = arith.constant 0 : i32
    %c0_i32_1 = arith.constant 0 : i32
    return %c0_i32, %c0_i32_0 : i32, i32
  }
  func.func @transform_1(%arg0: i32) -> (i32, i32) {
    %c0_i32 = arith.constant 0 : i32
    %c0_i32_0 = arith.constant 0 : i32
    return %c0_i32, %arg0 : i32, i32
  }
  func.func @transform_2(%arg0: i32) -> (i32, i32) {
    %c0_i32 = arith.constant 0 : i32
    %c0_i32_0 = arith.constant 0 : i32
    return %c0_i32, %arg0 : i32, i32
  }
  func.func @transform_3(%arg0: i32) -> (i32, i32) {
    %c0_i32 = arith.constant 0 : i32
    %c0_i32_0 = arith.constant 0 : i32
    return %c0_i32, %arg0 : i32, i32
  }
}

</mosaic_0001>

<bundles_post_ra>
// kernel: tpu_custom_call.1
= control target key start
LH: loop header
LB: loop body
LE: loop exit
PB: predicated region body
PF: predicated region fallthrough
CT: control target
= control target key end

     0   :  { %9 = vsyncpa [#allocation3], 0  ;;  %s636_s0 = inlined_call_operand.hbm [shape: f32[32,32], index: 0, kind: input, shape index: {}]   ;;  %s637_s1 = inlined_call_operand.hbm [shape: f32[32,128], index: 1, kind: input, shape index: {}]   ;;  %s638_s2 = inlined_call_operand.hbm [shape: f32[32,128], index: 2, kind: output, shape index: {0}]   ;;  %s639_s3 = inlined_call_operand.hbm [shape: f32[32,128], index: 3, kind: output, shape index: {1}]  }
   0x1   :  { %10 = vsyncpa [#allocation6], 0 }
   0x2   :  { %11 = vsyncpa [#allocation4], 0 }
   0x3   :  { %12 = vsyncpa [#allocation9], 0  ;;  %s526_s12 = smov [#allocation2]  }
   0x4   :  { %s18_s13 = sshll.u32 %s526_s12, 4  ;;  %s19_s13 = int_to_ptr.vmem [resolvable:$true] %s18_s13 }
   0x5   :  { %s446_s14 = scalar_lea.vmem %s19_s13, 512  ;;  %p451_p1 = scmp.lt.s32.totalorder %s19_s13, %s19_s13 }
   0x6   :  { %p447_p0 = scmp.ne.s32.totalorder %s19_s13, %s446_s14  ;;  %p452_p2 = scmp.lt.s32.totalorder %s446_s14, %s446_s14 }
   0x8   :  { %p453_p3 = por %p452_p2, %p451_p1 }
   0xa   :  { %p454_p4 = pnand %p453_p3, %p447_p0 }
   0xc   :  { %457 = shalt.err (!%p454_p4)
}
   0xd   :  { %s527_s15 = smov 128   ;;  %s528_s16 = smov 8  }
   0xe   :  { %24 = dma.hbm_to_vmem [thread:$0]  %s636_s0, 512, %s19_s13, [#allocation3], %s527_s15, %s527_s15, %s528_s16  }
   0xf   :  { %s529_s19 = smov [#allocation5]  }
  0x10   :  { %s30_s20 = sshll.u32 %s529_s19, 4  ;;  %s31_s20 = int_to_ptr.vmem [resolvable:$true] %s30_s20 }
  0x11   :  { %s466_s21 = scalar_lea.vmem %s31_s20, 512  ;;  %p471_p6 = scmp.lt.s32.totalorder %s31_s20, %s31_s20 }
  0x12   :  { %p467_p5 = scmp.ne.s32.totalorder %s31_s20, %s466_s21  ;;  %p472_p7 = scmp.lt.s32.totalorder %s466_s21, %s466_s21 }
  0x14   :  { %p473_p8 = por %p472_p7, %p471_p6 }
  0x16   :  { %p474_p9 = pnand %p473_p8, %p467_p5 }
  0x18   :  { %477 = shalt.err (!%p474_p9)
}
  0x19   :  { %36 = dma.hbm_to_vmem [thread:$0]  %s637_s1, 512, %s31_s20, [#allocation6], %s527_s15, %s527_s15, %s528_s16  }
  0x1a   :  { %518 = dma.done.wait [#allocation3], 512  }
  0x1b   :  { %519 = vsyncadd [#allocation3], 4294966784 }
  0x1c   :  { %520 = dma.done.wait [#allocation6], 512  }
  0x1d   :  { %521 = vsyncadd [#allocation6], 4294966784  ;;  %v50_v0 = vld [vmem:[#allocation5 + $0x18] sm:$0xff]  ;;  %v49_v1 = vld [vmem:[#allocation5 + $0x10] sm:$0xff]  ;;  %vm51_vm0 = vcmask 261120   ;;  %s530_s0 = smov [#allocation7]  }
  0x1e   :  { %410 = vmatprep.subr.mxu0 %v50_v0  ;;  %424 = vmatprep.subr.mxu1 %v50_v0  ;;  %v48_v2 = vld [vmem:[#allocation5 + $0x8] sm:$0xff]  ;;  %v47_v3 = vld [vmem:[#allocation5] sm:$0xff]  ;;  %v45_v5 = vld [vmem:[#allocation2 + $0x10] sm:$0xff]  ;;  %s369_s1 = sshll.u32 %s530_s0, 4  ;;  %s370_s1 = int_to_ptr.vmem [resolvable:$true] %s369_s1 }
  0x1f   :  { %411 = vmatpush3.msra.mxu0 %v50_v0  ;;  %428 = vmatpush3.msra.mxu1 %v50_v0  ;;  %v43_v4 = vld [vmem:[#allocation2] sm:$0xff]  ;;  %v44_v6 = vld [vmem:[#allocation2 + $0x8] sm:$0xff]  ;;  %v46_v7 = vld [vmem:[#allocation2 + $0x18] sm:$0xff]  ;;  %s478_s24 = scalar_lea.vmem %s370_s1, 512  ;;  %p483_p11 = scmp.lt.s32.totalorder %s370_s1, %s370_s1 }
  0x20   :  { %412 = vmatprep.subr.mxu0 %v49_v1  ;;  %425 = vmatprep.subr.mxu1 %v49_v1  ;;  %p479_p10 = scmp.ne.s32.totalorder %s370_s1, %s478_s24  ;;  %p484_p12 = scmp.lt.s32.totalorder %s478_s24, %s478_s24 }
  0x21   :  { %413 = vmatpush3.msra.mxu0 %v49_v1  ;;  %429 = vmatpush3.msra.mxu1 %v49_v1 }
  0x22   :  { %414 = vmatprep.subr.mxu0 %v48_v2  ;;  %426 = vmatprep.subr.mxu1 %v48_v2  ;;  %p485_p13 = por %p484_p12, %p483_p11 }
  0x23   :  { %415 = vmatpush3.msra.mxu0 %v48_v2  ;;  %430 = vmatpush3.msra.mxu1 %v48_v2 }
  0x24   :  { %416 = vmatprep.subr.mxu0 %v47_v3  ;;  %427 = vmatprep.subr.mxu1 %v47_v3  ;;  %p486_p0 = pnand %p485_p13, %p479_p10 }
  0x25   :  { %417 = vmatpush3.msra.mxu0 %v47_v3  ;;  %431 = vmatpush3.msra.mxu1 %v47_v3 }
  0x26   :  { %418 = vmatprep.mubr.msk.f32.mxu0 %vm51_vm0, %v43_v4  ;;  %421 = vmatprep.mubr.msk.f32.mxu1 %vm51_vm0, %v45_v5 }
  0x27   :  { %419 = vmatmul.mubr.msk.f32.vlgmr.msra.gmra.mxu0 %vm51_vm0, %v44_v6  ;;  %422 = vmatmul.mubr.msk.f32.vlgmr.msra.gmra.mxu1 %vm51_vm0, %v46_v7 }
  0xe7   :  { %v420_v8 = vpop.f32.mrf.mxu0  ;;  %v423_v9 = vpop.f32.mrf.mxu1 }
  0xe8   :  { %v204_v10 = vrot.slane %v420_v8, 1  ;;  %v245_v11 = vrot.slane %v420_v8, 2  ;;  %v285_v12 = vrot.slane %v420_v8, 3  ;;  %150 = vst [vmem:[#allocation7 + $0x8] sm:$0xff] %v420_v8  ;;  %152 = vst [vmem:[#allocation7 + $0x18] sm:$0xff] %v423_v9  ;;  %v208_v13 = vrot.slane %v423_v9, 1 }
  0xe9   :  { %v564_v14 = vpop.f32.mrf.mxu0  ;;  %v566_v15 = vpop.f32.mrf.mxu1  ;;  %v166_v16 = vmul.f32 %v420_v8, %v420_v8  ;;  %v167_v17 = vmul.f32 %v423_v9, %v423_v9  ;;  %v169_v18 = vmul.f32 %v423_v9, %v420_v8  ;;  %v248_v19 = vrot.slane %v423_v9, 2 }
  0xea   :  { %149 = vst [vmem:[#allocation7] sm:$0xff] %v564_v14  ;;  %151 = vst [vmem:[#allocation7 + $0x10] sm:$0xff] %v566_v15  ;;  %v206_v20 = vmul.f32 %v420_v8, %v204_v10  ;;  %v247_v21 = vmul.f32 %v420_v8, %v245_v11  ;;  %v570_v22 = vmul.f32 %v420_v8, %v285_v12 }
  0xeb   :  { %v572_v23 = vmul.f32 %v423_v9, %v204_v10 }
  0xec   :  { %489 = shalt.err (!%p486_p0)
}
  0xed   :  { %375 = dma.vmem_to_hbm [thread:$0]  %s370_s1, 512, %s638_s2, [#allocation4], %s527_s15, %s527_s15, %s528_s16   ;;  %v210_v24 = vmul.f32 %v423_v9, %v208_v13  ;;  %v580_v25 = vmul.f32 %v420_v8, %v208_v13  ;;  %v288_v26 = vrot.slane %v423_v9, 3  ;;  %v153_v27 = vmul.f32 %v564_v14, %v564_v14 }
  0xee   :  { %v184_v28 = vrot.slane %v564_v14, 1  ;;  %v227_v29 = vrot.slane %v564_v14, 2  ;;  %v267_v30 = vrot.slane %v564_v14, 3  ;;  %v154_v31 = vmul.f32 %v566_v15, %v566_v15  ;;  %s531_s2 = smov [#allocation8]  }
  0xef   :  { %v250_v32 = vmul.f32 %v423_v9, %v248_v19  ;;  %v589_v33 = vmul.f32 %v423_v9, %v245_v11  ;;  %v591_v34 = vmul.f32 %v420_v8, %v248_v19  ;;  %v156_v35 = vmul.f32 %v566_v15, %v564_v14  ;;  %s381_s27 = sshll.u32 %s531_s2, 4  ;;  %s382_s27 = int_to_ptr.vmem [resolvable:$true] %s381_s27 }
  0xf0   :  { %v595_v36 = vmul.f32 %v423_v9, %v288_v26  ;;  %v597_v37 = vmul.f32 %v423_v9, %v285_v12  ;;  %v155_v38 = vadd.f32 %v154_v31, %v153_v27  ;;  %v168_v39 = vadd.f32 %v167_v17, %v166_v16  ;;  %s498_s28 = scalar_lea.vmem %s382_s27, 512  ;;  %p503_p2 = scmp.lt.s32.totalorder %s382_s27, %s382_s27 }
  0xf1   :  { %v599_v40 = vmul.f32 %v420_v8, %v288_v26  ;;  %v186_v41 = vmul.f32 %v184_v28, %v564_v14  ;;  %v157_v42 = vsub.f32 %v156_v35, %v156_v35  ;;  %v188_v43 = vrot.slane %v566_v15, 1  ;;  %p499_p1 = scmp.ne.s32.totalorder %s382_s27, %s498_s28  ;;  %p504_p3 = scmp.lt.s32.totalorder %s498_s28, %s498_s28 }
  0xf2   :  { %v229_v44 = vmul.f32 %v227_v29, %v564_v14  ;;  %v269_v45 = vmul.f32 %v267_v30, %v564_v14  ;;  %v159_v46 = vrot.slane %v155_v38, 4  ;;  %v192_v47 = vmul.f32 %v184_v28, %v566_v15 }
  0xf3   :  { %v163_v48 = vrot.slane %v157_v42, 4  ;;  %v170_v49 = vsub.f32 %v169_v18, %v169_v18  ;;  %v190_v50 = vmul.f32 %v188_v43, %v566_v15  ;;  %v193_v51 = vmul.f32 %v188_v43, %v564_v14  ;;  %p505_p4 = por %p504_p3, %p503_p2 }
  0xf4   :  { %v161_v52 = vadd.f32 %v159_v46, %v155_v38  ;;  %v174_v53 = vrot.slane %v168_v39, 4  ;;  %v211_v54 = vadd.f32 %v210_v24, %v206_v20  ;;  %v230_v55 = vrot.slane %v566_v15, 2 }
  0xf5   :  { %v165_v56 = vadd.f32 %v163_v48, %v157_v42  ;;  %v191_v57 = vadd.f32 %v190_v50, %v186_v41  ;;  %v194_v58 = vsub.f32 %v192_v47, %v193_v51  ;;  %v234_v59 = vmul.f32 %v227_v29, %v566_v15  ;;  %p506_p5 = pnand %p505_p4, %p499_p1 }
  0xf6   :  { %v171_v60 = vadd.f32 %v168_v39, %v161_v52  ;;  %v214_v61 = vsub.f32 %v572_v23, %v580_v25  ;;  %v232_v62 = vmul.f32 %v230_v55, %v566_v15  ;;  %v235_v63 = vmul.f32 %v230_v55, %v564_v14 }
  0xf7   :  { %v172_v0 = vadd.f32 %v170_v49, %v165_v56  ;;  %v178_v1 = vrot.slane %v170_v49, 4  ;;  %v196_v2 = vrot.slane %v191_v57, 4  ;;  %v200_v3 = vrot.slane %v194_v58, 4 }
  0xf8   :  { %v176_v4 = vadd.f32 %v174_v53, %v171_v60  ;;  %v233_v5 = vadd.f32 %v232_v62, %v229_v44  ;;  %v236_v6 = vsub.f32 %v234_v59, %v235_v63  ;;  %v251_v7 = vadd.f32 %v250_v32, %v247_v21 }
  0xf9   :  { %v180_v8 = vadd.f32 %v178_v1, %v172_v0  ;;  %v198_v9 = vadd.f32 %v196_v2, %v191_v57  ;;  %v202_v10 = vadd.f32 %v200_v3, %v194_v58  ;;  %v254_v11 = vsub.f32 %v589_v33, %v591_v34 }
  0xfa   :  { %181 = vst [vmem:[#allocation8] sm:$0x1] %v176_v4  ;;  %v238_v12 = vrot.slane %v233_v5, 4  ;;  %v242_v13 = vrot.slane %v236_v6, 4  ;;  %v270_v16 = vrot.slane %v566_v15, 3  ;;  %v274_v17 = vmul.f32 %v267_v30, %v566_v15 }
  0xfb   :  { %320 = vst [vmem:[#allocation8 + $0x4] sm:$0x2] %v176_v4  ;;  %341 = vst [vmem:[#allocation8 + $0x8] sm:$0x4] %v176_v4  ;;  %v215_v18 = vadd.f32 %v211_v54, %v198_v9  ;;  %v216_v19 = vadd.f32 %v214_v61, %v202_v10  ;;  %v218_v20 = vrot.slane %v211_v54, 4  ;;  %v222_v21 = vrot.slane %v214_v61, 4 }
  0xfc   :  { %362 = vst [vmem:[#allocation8 + $0xc] sm:$0x8] %v176_v4  ;;  %182 = vst [vmem:[#allocation8 + $0x10] sm:$0x1] %v180_v8  ;;  %v240_v24 = vadd.f32 %v238_v12, %v233_v5  ;;  %v244_v26 = vadd.f32 %v242_v13, %v236_v6  ;;  %v272_v27 = vmul.f32 %v270_v16, %v566_v15  ;;  %v258_v30 = vrot.slane %v251_v7, 4 }
  0xfd   :  { %321 = vst [vmem:[#allocation8 + $0x14] sm:$0x2] %v180_v8  ;;  %342 = vst [vmem:[#allocation8 + $0x18] sm:$0x4] %v180_v8  ;;  %v275_v28 = vmul.f32 %v270_v16, %v564_v14  ;;  %v220_v29 = vadd.f32 %v218_v20, %v215_v18  ;;  %v224_v31 = vadd.f32 %v222_v21, %v216_v19  ;;  %v262_v32 = vrot.slane %v254_v11, 4 }
  0xfe   :  { %363 = vst [vmem:[#allocation8 + $0x1c] sm:$0x8] %v180_v8  ;;  %v255_v35 = vadd.f32 %v251_v7, %v240_v24  ;;  %v256_v38 = vadd.f32 %v254_v11, %v244_v26  ;;  %v273_v39 = vadd.f32 %v272_v27, %v269_v45  ;;  %v291_v42 = vadd.f32 %v595_v36, %v570_v22 }
  0xff   :  { %v276_v41 = vsub.f32 %v274_v17, %v275_v28  ;;  %225 = vst [vmem:[#allocation8 + $0x1] sm:$0x1] %v220_v29  ;;  %226 = vst [vmem:[#allocation8 + $0x11] sm:$0x1] %v224_v31  ;;  %v294_v43 = vsub.f32 %v597_v37, %v599_v40  ;;  %v307_v44 = vsub.f32 %v193_v51, %v192_v47 }
 0x100   :  { %318 = vst [vmem:[#allocation8 + $0x4] sm:$0x1] %v220_v29  ;;  %322 = vst [vmem:[#allocation8 + $0x5] sm:$0x2] %v220_v29  ;;  %v326_v14 = vsub.f32 %v235_v63, %v234_v59  ;;  %v260_v15 = vadd.f32 %v258_v30, %v255_v35  ;;  %v264_v45 = vadd.f32 %v262_v32, %v256_v38  ;;  %v278_v46 = vrot.slane %v273_v39, 4 }
 0x101   :  { %323 = vst [vmem:[#allocation8 + $0x15] sm:$0x2] %v224_v31  ;;  %339 = vst [vmem:[#allocation8 + $0x8] sm:$0x2] %v220_v29  ;;  %v282_v48 = vrot.slane %v276_v41, 4  ;;  %v309_v49 = vrot.slane %v307_v44, 4  ;;  %v312_v22 = vsub.f32 %v580_v25, %v572_v23  ;;  %v331_v47 = vsub.f32 %v591_v34, %v589_v33 }
 0x102   :  { %343 = vst [vmem:[#allocation8 + $0x9] sm:$0x4] %v220_v29  ;;  %344 = vst [vmem:[#allocation8 + $0x19] sm:$0x4] %v224_v31  ;;  %v328_v36 = vrot.slane %v326_v14, 4  ;;  %v280_v50 = vadd.f32 %v278_v46, %v273_v39  ;;  %v345_v52 = vsub.f32 %v275_v28, %v274_v17  ;;  %v298_v53 = vrot.slane %v291_v42, 4 }
 0x103   :  { %360 = vst [vmem:[#allocation8 + $0xc] sm:$0x4] %v220_v29  ;;  %265 = vst [vmem:[#allocation8 + $0x2] sm:$0x1] %v260_v15  ;;  %v284_v51 = vadd.f32 %v282_v48, %v276_v41  ;;  %v302_v54 = vrot.slane %v294_v43, 4  ;;  %v311_v55 = vadd.f32 %v309_v49, %v307_v44  ;;  %v350_v25 = vsub.f32 %v599_v40, %v597_v37 }
 0x104   :  { %266 = vst [vmem:[#allocation8 + $0x12] sm:$0x1] %v264_v45  ;;  %324 = vst [vmem:[#allocation8 + $0x6] sm:$0x2] %v260_v15  ;;  %v330_v56 = vadd.f32 %v328_v36, %v326_v14  ;;  %v295_v57 = vadd.f32 %v291_v42, %v280_v50  ;;  %v347_v23 = vrot.slane %v345_v52, 4  ;;  %v315_v34 = vrot.slane %v312_v22, 4 }
 0x105   :  { %325 = vst [vmem:[#allocation8 + $0x16] sm:$0x2] %v264_v45  ;;  %337 = vst [vmem:[#allocation8 + $0x8] sm:$0x1] %v260_v15  ;;  %v296_v58 = vadd.f32 %v294_v43, %v284_v51  ;;  %v313_v33 = vadd.f32 %v312_v22, %v311_v55  ;;  %v334_v60 = vrot.slane %v331_v47, 4  ;;  %v353_v3 = vrot.slane %v350_v25, 4 }
 0x106   :  { %358 = vst [vmem:[#allocation8 + $0xc] sm:$0x2] %v260_v15  ;;  %v332_v59 = vadd.f32 %v331_v47, %v330_v56  ;;  %v300_v61 = vadd.f32 %v298_v53, %v295_v57  ;;  %v349_v63 = vadd.f32 %v347_v23, %v345_v52 }
 0x107   :  { %v304_v62 = vadd.f32 %v302_v54, %v296_v58  ;;  %v317_v0 = vadd.f32 %v315_v34, %v313_v33 }
 0x108   :  { %v336_v1 = vadd.f32 %v334_v60, %v332_v59  ;;  %305 = vst [vmem:[#allocation8 + $0x3] sm:$0x1] %v300_v61  ;;  %v351_v2 = vadd.f32 %v350_v25, %v349_v63  ;;  %356 = vst [vmem:[#allocation8 + $0xc] sm:$0x1] %v300_v61 }
 0x109   :  { %306 = vst [vmem:[#allocation8 + $0x13] sm:$0x1] %v304_v62  ;;  %319 = vst [vmem:[#allocation8 + $0x14] sm:$0x1] %v317_v0 }
 0x10a   :  { %338 = vst [vmem:[#allocation8 + $0x18] sm:$0x1] %v336_v1  ;;  %340 = vst [vmem:[#allocation8 + $0x18] sm:$0x2] %v317_v0  ;;  %v355_v37 = vadd.f32 %v353_v3, %v351_v2 }
 0x10b   :  { %359 = vst [vmem:[#allocation8 + $0x1c] sm:$0x2] %v336_v1  ;;  %361 = vst [vmem:[#allocation8 + $0x1c] sm:$0x4] %v317_v0 }
 0x10c   :  { %357 = vst [vmem:[#allocation8 + $0x1c] sm:$0x1] %v355_v37 }
 0x10d   :  { %509 = shalt.err (!%p506_p5)
}
 0x10e   :  { %387 = dma.vmem_to_hbm [thread:$0]  %s382_s27, 512, %s639_s3, [#allocation9], %s527_s15, %s527_s15, %s528_s16  }
 0x10f   :  { %522 = dma.done.wait [#allocation4], 512  }
 0x110   :  { %523 = vsyncadd [#allocation4], 4294966784 }
 0x111   :  { %524 = dma.done.wait [#allocation9], 512  }
 0x112   :  { %525 = vsyncadd [#allocation9], 4294966784 }
 0x113   :  { %394 = vsyncpa [#allocation3], 1 }
 0x114   :  { %395 = vsyncpa [#allocation6], 1 }
 0x115   :  { %396 = vsyncpa [#allocation4], 1 }
 0x116   :  { %397 = vsyncpa [#allocation9], 1 }

</bundles_post_ra>
